<compile_context>
chip_gen: v6e
topology: v6e:2x2x1
jax: 0.10.0
libtpu: 0.0.40
codegen_flags: <defaults>
</compile_context>

<pallas_src>
import jax
import jax.numpy as jnp
from jax.experimental import pallas as pl
from jax.experimental.pallas import tpu as pltpu


# Above this channel count a single K=C dot already fills the MXU contraction
# depth (256 on v6e/v7x), so the 9-way im2col concat stops paying for its copy
# traffic and we use 9 accumulating K=C dots instead.
_IM2COL_MAX_C = 256


def _conv3x3(pad_ref, rows, w, c, w9_ref):
    """3x3 'valid' conv over a zero-bordered (rows+2, w+2, c) VMEM window.

    Returns a (rows * w, Cout) float32 accumulator.  Each tap is cast to bf16
    individually so no f32 im2col patch is ever materialized."""
    taps = [pad_ref[dy:dy + rows, dx:dx + w, :].astype(jnp.bfloat16)
            for dy in range(3) for dx in range(3)]
    if c < _IM2COL_MAX_C:
        # Single MXU matmul with K = 9*c.
        patch = jnp.concatenate(taps, axis=-1).reshape(rows * w, 9 * c)
        return jnp.dot(patch, w9_ref[...], preferred_element_type=jnp.float32)
    # K = c already fills the MXU: accumulate 9 separate dots instead.
    acc = None
    for t, tap in enumerate(taps):
        d = jnp.dot(tap.reshape(rows * w, c), w9_ref[t * c:(t + 1) * c, :],
                    preferred_element_type=jnp.float32)
        acc = d if acc is None else acc + d
    return acc


def _basic_block_kernel(x_ref, w1_ref, w2_ref, s1_ref, b1_ref, s2_ref, b2_ref,
                        out_ref, pad1_ref, pad2_ref):
    """One (batch element, H-strip) per grid step.

    x_ref    : (1, H, W, C)            full-H NHWC input block (f32), revisited
                                       across the strip axis
    w1_ref   : (9*C, C)                conv1 weights, row = (dy*3+dx)*C + cin (bf16)
    w2_ref   : (9*C, C)                conv2 weights (bf16)
    s*/b*    : (1, C)                  folded BN scale / bias (f32)
    out_ref  : (1, TH, W, C)           output strip (f32)
    pad1_ref : VMEM (TH+4, W+2, C) f32 zero-bordered input window (2-row halo)
    pad2_ref : VMEM (TH+2, W+2, C) f32 zero-bordered conv1-output window
    """
    th = out_ref.shape[1]
    w = out_ref.shape[2]
    c = out_ref.shape[3]

    s = pl.program_id(1)
    n_strips = pl.num_programs(1)
    row0 = s * th                       # first output row of this strip

    # ---- stage the zero-bordered input window for conv1 -------------------
    # pad1 row i  <->  global input row (row0 - 2 + i); out-of-image rows = 0.
    zcol1 = jnp.zeros((th + 4, 1, c), pad1_ref.dtype)
    pad1_ref[:, 0:1, :] = zcol1
    pad1_ref[:, w + 1:w + 2, :] = zcol1
    pad1_ref[2:th + 2, 1:w + 1, :] = x_ref[0, pl.ds(row0, th), :, :]

    @pl.when(s == 0)
    def _():
        pad1_ref[0:2, :, :] = jnp.zeros((2, w + 2, c), pad1_ref.dtype)

    @pl.when(s > 0)
    def _():
        pad1_ref[0:2, 1:w + 1, :] = x_ref[0, pl.ds(row0 - 2, 2), :, :]

    @pl.when(s == n_strips - 1)
    def _():
        pad1_ref[th + 2:th + 4, :, :] = jnp.zeros((2, w + 2, c), pad1_ref.dtype)

    @pl.when(s < n_strips - 1)
    def _():
        pad1_ref[th + 2:th + 4, 1:w + 1, :] = x_ref[0, pl.ds(row0 + th, 2), :, :]

    # ---- conv1 -> bn1 -> relu  (TH + 2 rows: the strip plus a 1-row halo) --
    acc1 = _conv3x3(pad1_ref, th + 2, w, c, w1_ref)
    mid = jnp.maximum(acc1 * s1_ref[...] + b1_ref[...], 0.0)   # ((TH+2)*W, C) f32

    zcol2 = jnp.zeros((th + 2, 1, c), pad2_ref.dtype)
    pad2_ref[:, 0:1, :] = zcol2
    pad2_ref[:, w + 1:w + 2, :] = zcol2
    pad2_ref[0:th + 2, 1:w + 1, :] = mid.reshape(th + 2, w, c)

    # Rows of the intermediate feature map outside the image are conv2's zero
    # padding, not conv1 evaluated out of range — overwrite them with zeros.
    @pl.when(s == 0)
    def _():
        pad2_ref[0:1, :, :] = jnp.zeros((1, w + 2, c), pad2_ref.dtype)

    @pl.when(s == n_strips - 1)
    def _():
        pad2_ref[th + 1:th + 2, :, :] = jnp.zeros((1, w + 2, c), pad2_ref.dtype)

    # ---- conv2 -> bn2 -> residual add -> relu ------------------------------
    acc2 = _conv3x3(pad2_ref, th, w, c, w2_ref)
    residual = pad1_ref[2:th + 2, 1:w + 1, :].reshape(th * w, c)   # f32, exact
    out = jnp.maximum(acc2 * s2_ref[...] + b2_ref[...] + residual, 0.0)
    out_ref[...] = out.reshape(1, th, w, c).astype(out_ref.dtype)


def _pick_strip_rows(h, w):
    """Strip height: whole image for small maps (keep M = H*W), otherwise the
    largest divisor of H that is <= 16 so per-step VMEM stays bounded and the
    grid has enough steps to pipeline / split across TensorCores."""
    if h * w <= 1024:
        return h
    for th in range(min(16, h), 1, -1):
        if h % th == 0:
            return th
    return h


def basic_block_pallas(x_nchw, w1, bn1, w2, bn2, eps=1e-5, strip_rows=None):
    """x_nchw: (N, C, H, W) f32.  w*: (Cout, Cin, 3, 3).  bn*: dict of
    gamma/beta/mean/var, each (Cout,).  Returns (N, C, H, W) f32."""
    n, cin, h, w = x_nchw.shape
    cout = w1.shape[0]
    assert cin == cout, "BasicBlock with downsample=None needs inplanes == planes"
    assert w2.shape == (cout, cout, 3, 3)

    th = _pick_strip_rows(h, w) if strip_rows is None else int(strip_rows)
    assert h % th == 0 and (th >= 2 or th == h), "strip_rows must divide H (>=2)"
    n_strips = h // th

    # NCHW -> NHWC (channels on the 128-lane axis).  No spatial pad here; the
    # zero border lives in the kernel's VMEM scratch.
    x_nhwc = jnp.transpose(x_nchw, (0, 2, 3, 1)).astype(jnp.float32)

    # (Cout, Cin, 3, 3) -> (9*Cin, Cout), row index = (dy*3+dx)*Cin + cin, bf16.
    def prep_w(wt):
        return (jnp.transpose(wt, (2, 3, 1, 0))
                .reshape(9 * wt.shape[1], wt.shape[0])
                .astype(jnp.bfloat16))

    def fold_bn(bn):
        scale = bn["gamma"] / jnp.sqrt(bn["var"] + eps)
        bias = bn["beta"] - bn["mean"] * scale
        return (scale.reshape(1, -1).astype(jnp.float32),
                bias.reshape(1, -1).astype(jnp.float32))

    w1_t, w2_t = prep_w(w1), prep_w(w2)
    s1, b1 = fold_bn(bn1)
    s2, b2 = fold_bn(bn2)

    # Rough per-step VMEM footprint -> explicit scoped-VMEM limit (v5e default
    # is only 16 MiB).  Never request more than v7x's 64 MiB of physical VMEM.
    f32b, bf16b = 4, 2
    est = (2 * h * w * cin * f32b                              # dbl-buffered input
           + 2 * th * w * cout * f32b                          # dbl-buffered output
           + 2 * 9 * cin * cout * bf16b                        # single-buffered weights
           + ((th + 4) + (th + 2)) * (w + 2) * cin * f32b      # padded scratches
           + ((th + 2) + th) * w * 9 * cin * bf16b             # bf16 im2col patches
           + 2 * ((th + 2) + th) * w * cout * f32b)            # f32 accumulators
    vmem_limit = int(min(max(2 * est, 32 * 2**20), 64 * 2**20))

    flops = 4 * n * h * w * 9 * cin * cout                     # two 3x3 convs
    bytes_accessed = (2 * n * h * w * cin * 4                  # read x + write out
                      + 2 * 9 * cin * cout * 2 + 4 * cout * 4)  # weights + BN

    out_nhwc = pl.pallas_call(
        _basic_block_kernel,
        out_shape=jax.ShapeDtypeStruct((n, h, w, cout), jnp.float32),
        grid_spec=pltpu.PrefetchScalarGridSpec(
            num_scalar_prefetch=0,
            grid=(n, n_strips),
            in_specs=[
                # Full-H input block; index depends only on the batch axis, so
                # it is re-DMA'd once per batch element and sliced per strip.
                pl.BlockSpec((1, h, w, cin), lambda b, s: (b, 0, 0, 0)),
                pl.BlockSpec((9 * cin, cout), lambda b, s: (0, 0),
                             pipeline_mode=pl.Buffered(1)),
                pl.BlockSpec((9 * cout, cout), lambda b, s: (0, 0),
                             pipeline_mode=pl.Buffered(1)),
                pl.BlockSpec((1, cout), lambda b, s: (0, 0)),
                pl.BlockSpec((1, cout), lambda b, s: (0, 0)),
                pl.BlockSpec((1, cout), lambda b, s: (0, 0)),
                pl.BlockSpec((1, cout), lambda b, s: (0, 0)),
            ],
            out_specs=pl.BlockSpec((1, th, w, cout), lambda b, s: (b, s, 0, 0)),
            scratch_shapes=[
                pltpu.VMEM((th + 4, w + 2, cin), jnp.float32),   # padded x window
                pltpu.VMEM((th + 2, w + 2, cout), jnp.float32),  # padded conv1 out
            ],
        ),
        compiler_params=pltpu.CompilerParams(
            dimension_semantics=("parallel", "parallel"),
            vmem_limit_bytes=vmem_limit),
        cost_estimate=pl.CostEstimate(flops=flops, transcendentals=0,
                                      bytes_accessed=bytes_accessed),
    )(x_nhwc, w1_t, w2_t, s1, b1, s2, b2)

    return jnp.transpose(out_nhwc, (0, 3, 1, 2))


def basic_block_reference(x, w1, bn1, w2, bn2, eps=1e-5):
    """Pure-JAX NCHW reference (mirrors the PyTorch forward in eval mode)."""
    def conv(inp, wt):
        return jax.lax.conv_general_dilated(
            inp, wt, window_strides=(1, 1), padding=((1, 1), (1, 1)),
            dimension_numbers=("NCHW", "OIHW", "NCHW"))

    def bn(inp, p):
        sc = (p["gamma"] / jnp.sqrt(p["var"] + eps)).reshape(1, -1, 1, 1)
        bi = (p["beta"] - p["mean"] * p["gamma"] / jnp.sqrt(p["var"] + eps)).reshape(1, -1, 1, 1)
        return inp * sc + bi

    out = jax.nn.relu(bn(conv(x, w1), bn1))
    out = bn(conv(out, w2), bn2)
    return jax.nn.relu(out + x)


if __name__ == "__main__":
    key = jax.random.PRNGKey(0)
    k_x, k_w1, k_w2, k_g1, k_g2 = jax.random.split(key, 5)

    N, C, H, W = 2, 8, 16, 16          # inplanes = planes = 8, stride = 1
    x = jax.random.normal(k_x, (N, C, H, W), jnp.float32)

    w1 = 0.1 * jax.random.normal(k_w1, (C, C, 3, 3), jnp.float32)
    w2 = 0.1 * jax.random.normal(k_w2, (C, C, 3, 3), jnp.float32)

    bn1 = dict(gamma=1.0 + 0.1 * jax.random.normal(k_g1, (C,), jnp.float32),
               beta=jnp.linspace(-0.2, 0.2, C, dtype=jnp.float32),
               mean=jnp.linspace(-0.1, 0.1, C, dtype=jnp.float32),
               var=jnp.linspace(0.5, 1.5, C, dtype=jnp.float32))
    bn2 = dict(gamma=1.0 + 0.1 * jax.random.normal(k_g2, (C,), jnp.float32),
               beta=jnp.linspace(0.2, -0.2, C, dtype=jnp.float32),
               mean=jnp.linspace(0.1, -0.1, C, dtype=jnp.float32),
               var=jnp.linspace(1.5, 0.5, C, dtype=jnp.float32))

    ref = jax.block_until_ready(basic_block_reference(x, w1, bn1, w2, bn2))

    # Exercise both the multi-strip path (grid = (N, 2), halo copies + boundary
    # zeroing) and the single-strip path (grid = (N, 1)).
    out_strips = jax.block_until_ready(
        basic_block_pallas(x, w1, bn1, w2, bn2, strip_rows=8))
    out_single = jax.block_until_ready(
        basic_block_pallas(x, w1, bn1, w2, bn2))

    assert out_strips.shape == (N, C, H, W)
    # bf16 MXU operands (f32 accumulation) -> tolerance loosened vs pure f32.
    assert jnp.max(jnp.abs(out_strips - ref)) < 5e-2, "strip kernel mismatch"
    assert jnp.max(jnp.abs(out_single - ref)) < 5e-2, "single-strip mismatch"
    print("KERNEL_OK")
</pallas_src>

<mosaic_0001>
module attributes {stable_mosaic.version = 11 : i64} {
  func.func @_basic_block_kernel(%arg0: i32, %arg1: i32, %arg2: memref<1x16x16x8xf32, #tpu.memory_space<vmem>>, %arg3: memref<72x8xbf16, #tpu.memory_space<vmem>>, %arg4: memref<72x8xbf16, #tpu.memory_space<vmem>>, %arg5: memref<1x8xf32, #tpu.memory_space<vmem>>, %arg6: memref<1x8xf32, #tpu.memory_space<vmem>>, %arg7: memref<1x8xf32, #tpu.memory_space<vmem>>, %arg8: memref<1x8xf32, #tpu.memory_space<vmem>>, %arg9: memref<1x8x16x8xf32, #tpu.memory_space<vmem>>, %arg10: memref<12x18x8xf32, #tpu.memory_space<vmem>>, %arg11: memref<10x18x8xf32, #tpu.memory_space<vmem>>) attributes {dimension_semantics = [#tpu.dimension_semantics<parallel>, #tpu.dimension_semantics<parallel>], iteration_bounds = array<i64: 2, 2>, scalar_prefetch = 0 : i64, scratch_operands = 2 : i64, tpu.core_type = #tpu.core_type<tc>, window_params = [{transform_indices = @transform_0, window_bounds = array<i64: 1, 16, 16, 8>}, {pipeline_mode = #tpu.pipeline_mode<synchronous>, transform_indices = @transform_1, window_bounds = array<i64: 72, 8>}, {pipeline_mode = #tpu.pipeline_mode<synchronous>, transform_indices = @transform_2, window_bounds = array<i64: 72, 8>}, {pipeline_mode = #tpu.pipeline_mode<synchronous>, transform_indices = @transform_3, window_bounds = array<i64: 1, 8>}, {pipeline_mode = #tpu.pipeline_mode<synchronous>, transform_indices = @transform_4, window_bounds = array<i64: 1, 8>}, {pipeline_mode = #tpu.pipeline_mode<synchronous>, transform_indices = @transform_5, window_bounds = array<i64: 1, 8>}, {pipeline_mode = #tpu.pipeline_mode<synchronous>, transform_indices = @transform_6, window_bounds = array<i64: 1, 8>}, {transform_indices = @transform_7, window_bounds = array<i64: 1, 8, 16, 8>}]} {
    %c8_i32 = arith.constant 8 : i32
    %0 = arith.muli %arg1, %c8_i32 : i32
    %cst = arith.constant 0.000000e+00 : f32
    %1 = vector.broadcast %cst : f32 to vector<12x1x8xf32>
    %c0 = arith.constant 0 : index
    %c0_0 = arith.constant 0 : index
    %c0_1 = arith.constant 0 : index
    %2 = vector.load %arg10[%c0, %c0_0, %c0_1] : memref<12x18x8xf32, #tpu.memory_space<vmem>>, vector<12x1x8xf32>
    tpu.vector_store %arg10[%c0, %c0_0, %c0_1], %1 {strides = array<i32>} : memref<12x18x8xf32, #tpu.memory_space<vmem>>, vector<12x1x8xf32>,
    %c0_2 = arith.constant 0 : index
    %c17 = arith.constant 17 : index
    %c0_3 = arith.constant 0 : index
    %3 = vector.load %arg10[%c0_2, %c17, %c0_3] : memref<12x18x8xf32, #tpu.memory_space<vmem>>, vector<12x1x8xf32>
    tpu.vector_store %arg10[%c0_2, %c17, %c0_3], %1 {strides = array<i32>} : memref<12x18x8xf32, #tpu.memory_space<vmem>>, vector<12x1x8xf32>,
    %c0_4 = arith.constant 0 : index
    %4 = arith.index_cast %0 : i32 to index
    %c0_5 = arith.constant 0 : index
    %c0_6 = arith.constant 0 : index
    %5 = vector.load %arg2[%c0_4, %4, %c0_5, %c0_6] : memref<1x16x16x8xf32, #tpu.memory_space<vmem>>, vector<1x8x16x8xf32>
    %6 = vector.shape_cast %5 : vector<1x8x16x8xf32> to vector<8x16x8xf32>
    %c2 = arith.constant 2 : index
    %c1 = arith.constant 1 : index
    %c0_7 = arith.constant 0 : index
    %7 = vector.load %arg10[%c2, %c1, %c0_7] : memref<12x18x8xf32, #tpu.memory_space<vmem>>, vector<8x16x8xf32>
    tpu.vector_store %arg10[%c2, %c1, %c0_7], %6 {strides = array<i32>} : memref<12x18x8xf32, #tpu.memory_space<vmem>>, vector<8x16x8xf32>,
    %c0_i32 = arith.constant 0 : i32
    %8 = arith.cmpi eq, %arg1, %c0_i32 : i32
    %9 = arith.extui %8 : i1 to i32
    %c0_i32_8 = arith.constant 0 : i32
    %10 = arith.cmpi ne, %9, %c0_i32_8 : i32
    scf.if %10 {
      %cst_105 = arith.constant 0.000000e+00 : f32
      %96 = vector.broadcast %cst_105 : f32 to vector<2x18x8xf32>
      %c0_106 = arith.constant 0 : index
      %c0_107 = arith.constant 0 : index
      %c0_108 = arith.constant 0 : index
      %97 = vector.load %arg10[%c0_106, %c0_107, %c0_108] : memref<12x18x8xf32, #tpu.memory_space<vmem>>, vector<2x18x8xf32>
      tpu.vector_store %arg10[%c0_106, %c0_107, %c0_108], %96 {strides = array<i32>} : memref<12x18x8xf32, #tpu.memory_space<vmem>>, vector<2x18x8xf32>,
    } else {
    }
    %c0_i32_9 = arith.constant 0 : i32
    %11 = arith.cmpi sgt, %arg1, %c0_i32_9 : i32
    %12 = arith.extui %11 : i1 to i32
    %c0_i32_10 = arith.constant 0 : i32
    %13 = arith.cmpi ne, %12, %c0_i32_10 : i32
    scf.if %13 {
      %c2_i32 = arith.constant 2 : i32
      %96 = arith.subi %0, %c2_i32 : i32
      %c0_105 = arith.constant 0 : index
      %97 = arith.index_cast %96 : i32 to index
      %c0_106 = arith.constant 0 : index
      %c0_107 = arith.constant 0 : index
      %98 = vector.load %arg2[%c0_105, %97, %c0_106, %c0_107] : memref<1x16x16x8xf32, #tpu.memory_space<vmem>>, vector<1x2x16x8xf32>
      %99 = vector.shape_cast %98 : vector<1x2x16x8xf32> to vector<2x16x8xf32>
      %c0_108 = arith.constant 0 : index
      %c1_109 = arith.constant 1 : index
      %c0_110 = arith.constant 0 : index
      %100 = vector.load %arg10[%c0_108, %c1_109, %c0_110] : memref<12x18x8xf32, #tpu.memory_space<vmem>>, vector<2x16x8xf32>
      tpu.vector_store %arg10[%c0_108, %c1_109, %c0_110], %99 {strides = array<i32>} : memref<12x18x8xf32, #tpu.memory_space<vmem>>, vector<2x16x8xf32>,
    } else {
    }
    %c1_i32 = arith.constant 1 : i32
    %14 = arith.cmpi eq, %arg1, %c1_i32 : i32
    %15 = arith.extui %14 : i1 to i32
    %c0_i32_11 = arith.constant 0 : i32
    %16 = arith.cmpi ne, %15, %c0_i32_11 : i32
    scf.if %16 {
      %cst_105 = arith.constant 0.000000e+00 : f32
      %96 = vector.broadcast %cst_105 : f32 to vector<2x18x8xf32>
      %c10 = arith.constant 10 : index
      %c0_106 = arith.constant 0 : index
      %c0_107 = arith.constant 0 : index
      %97 = vector.load %arg10[%c10, %c0_106, %c0_107] : memref<12x18x8xf32, #tpu.memory_space<vmem>>, vector<2x18x8xf32>
      tpu.vector_store %arg10[%c10, %c0_106, %c0_107], %96 {strides = array<i32>} : memref<12x18x8xf32, #tpu.memory_space<vmem>>, vector<2x18x8xf32>,
    } else {
    }
    %c1_i32_12 = arith.constant 1 : i32
    %17 = arith.cmpi slt, %arg1, %c1_i32_12 : i32
    %18 = arith.extui %17 : i1 to i32
    %c0_i32_13 = arith.constant 0 : i32
    %19 = arith.cmpi ne, %18, %c0_i32_13 : i32
    scf.if %19 {
      %c8_i32_105 = arith.constant 8 : i32
      %96 = arith.addi %0, %c8_i32_105 : i32
      %c0_106 = arith.constant 0 : index
      %97 = arith.index_cast %96 : i32 to index
      %c0_107 = arith.constant 0 : index
      %c0_108 = arith.constant 0 : index
      %98 = vector.load %arg2[%c0_106, %97, %c0_107, %c0_108] : memref<1x16x16x8xf32, #tpu.memory_space<vmem>>, vector<1x2x16x8xf32>
      %99 = vector.shape_cast %98 : vector<1x2x16x8xf32> to vector<2x16x8xf32>
      %c10 = arith.constant 10 : index
      %c1_109 = arith.constant 1 : index
      %c0_110 = arith.constant 0 : index
      %100 = vector.load %arg10[%c10, %c1_109, %c0_110] : memref<12x18x8xf32, #tpu.memory_space<vmem>>, vector<2x16x8xf32>
      tpu.vector_store %arg10[%c10, %c1_109, %c0_110], %99 {strides = array<i32>} : memref<12x18x8xf32, #tpu.memory_space<vmem>>, vector<2x16x8xf32>,
    } else {
    }
    %c0_14 = arith.constant 0 : index
    %c0_15 = arith.constant 0 : index
    %c0_16 = arith.constant 0 : index
    %20 = vector.load %arg10[%c0_14, %c0_15, %c0_16] : memref<12x18x8xf32, #tpu.memory_space<vmem>>, vector<10x16x8xf32>
    %21 = arith.truncf %20 : vector<10x16x8xf32> to vector<10x16x8xbf16>
    %c0_17 = arith.constant 0 : index
    %c1_18 = arith.constant 1 : index
    %c0_19 = arith.constant 0 : index
    %22 = vector.load %arg10[%c0_17, %c1_18, %c0_19] : memref<12x18x8xf32, #tpu.memory_space<vmem>>, vector<10x16x8xf32>
    %23 = arith.truncf %22 : vector<10x16x8xf32> to vector<10x16x8xbf16>
    %c0_20 = arith.constant 0 : index
    %c2_21 = arith.constant 2 : index
    %c0_22 = arith.constant 0 : index
    %24 = vector.load %arg10[%c0_20, %c2_21, %c0_22] : memref<12x18x8xf32, #tpu.memory_space<vmem>>, vector<10x16x8xf32>
    %25 = arith.truncf %24 : vector<10x16x8xf32> to vector<10x16x8xbf16>
    %c1_23 = arith.constant 1 : index
    %c0_24 = arith.constant 0 : index
    %c0_25 = arith.constant 0 : index
    %26 = vector.load %arg10[%c1_23, %c0_24, %c0_25] : memref<12x18x8xf32, #tpu.memory_space<vmem>>, vector<10x16x8xf32>
    %27 = arith.truncf %26 : vector<10x16x8xf32> to vector<10x16x8xbf16>
    %c1_26 = arith.constant 1 : index
    %c1_27 = arith.constant 1 : index
    %c0_28 = arith.constant 0 : index
    %28 = vector.load %arg10[%c1_26, %c1_27, %c0_28] : memref<12x18x8xf32, #tpu.memory_space<vmem>>, vector<10x16x8xf32>
    %29 = arith.truncf %28 : vector<10x16x8xf32> to vector<10x16x8xbf16>
    %c1_29 = arith.constant 1 : index
    %c2_30 = arith.constant 2 : index
    %c0_31 = arith.constant 0 : index
    %30 = vector.load %arg10[%c1_29, %c2_30, %c0_31] : memref<12x18x8xf32, #tpu.memory_space<vmem>>, vector<10x16x8xf32>
    %31 = arith.truncf %30 : vector<10x16x8xf32> to vector<10x16x8xbf16>
    %c2_32 = arith.constant 2 : index
    %c0_33 = arith.constant 0 : index
    %c0_34 = arith.constant 0 : index
    %32 = vector.load %arg10[%c2_32, %c0_33, %c0_34] : memref<12x18x8xf32, #tpu.memory_space<vmem>>, vector<10x16x8xf32>
    %33 = arith.truncf %32 : vector<10x16x8xf32> to vector<10x16x8xbf16>
    %c2_35 = arith.constant 2 : index
    %c1_36 = arith.constant 1 : index
    %c0_37 = arith.constant 0 : index
    %34 = vector.load %arg10[%c2_35, %c1_36, %c0_37] : memref<12x18x8xf32, #tpu.memory_space<vmem>>, vector<10x16x8xf32>
    %35 = arith.truncf %34 : vector<10x16x8xf32> to vector<10x16x8xbf16>
    %c2_38 = arith.constant 2 : index
    %c2_39 = arith.constant 2 : index
    %c0_40 = arith.constant 0 : index
    %36 = vector.load %arg10[%c2_38, %c2_39, %c0_40] : memref<12x18x8xf32, #tpu.memory_space<vmem>>, vector<10x16x8xf32>
    %37 = arith.truncf %36 : vector<10x16x8xf32> to vector<10x16x8xbf16>
    %38 = tpu.concatenate %21, %23, %25, %27, %29, %31, %33, %35, %37 in 2 : vector<10x16x8xbf16>, vector<10x16x8xbf16>, vector<10x16x8xbf16>, vector<10x16x8xbf16>, vector<10x16x8xbf16>, vector<10x16x8xbf16>, vector<10x16x8xbf16>, vector<10x16x8xbf16>, vector<10x16x8xbf16> -> vector<10x16x72xbf16>
    %39 = vector.shape_cast %38 : vector<10x16x72xbf16> to vector<160x72xbf16>
    %c0_41 = arith.constant 0 : index
    %c0_42 = arith.constant 0 : index
    %40 = vector.load %arg3[%c0_41, %c0_42] : memref<72x8xbf16, #tpu.memory_space<vmem>>, vector<72x8xbf16>
    %cst_43 = arith.constant dense<0.000000e+00> : vector<160x8xf32>
    %41 = tpu.matmul %39, %40, %cst_43 {dimension_numbers = #tpu.dot_dimension_numbers<[1], [0], [0], [1], [0, 0, 1, 1], [], []>} : vector<160x72xbf16>, vector<72x8xbf16>, vector<160x8xf32> -> vector<160x8xf32>
    %c0_44 = arith.constant 0 : index
    %c0_45 = arith.constant 0 : index
    %42 = vector.load %arg5[%c0_44, %c0_45] : memref<1x8xf32, #tpu.memory_space<vmem>>, vector<1x8xf32>
    %43 = vector.broadcast %42 : vector<1x8xf32> to vector<160x8xf32>
    %44 = arith.mulf %41, %43 : vector<160x8xf32>
    %c0_46 = arith.constant 0 : index
    %c0_47 = arith.constant 0 : index
    %45 = vector.load %arg6[%c0_46, %c0_47] : memref<1x8xf32, #tpu.memory_space<vmem>>, vector<1x8xf32>
    %46 = vector.broadcast %45 : vector<1x8xf32> to vector<160x8xf32>
    %47 = arith.addf %44, %46 : vector<160x8xf32>
    %cst_48 = arith.constant 0.000000e+00 : f32
    %48 = vector.broadcast %cst_48 : f32 to vector<160x8xf32>
    %49 = arith.maximumf %47, %48 : vector<160x8xf32>
    %cst_49 = arith.constant 0.000000e+00 : f32
    %50 = vector.broadcast %cst_49 : f32 to vector<10x1x8xf32>
    %c0_50 = arith.constant 0 : index
    %c0_51 = arith.constant 0 : index
    %c0_52 = arith.constant 0 : index
    %51 = vector.load %arg11[%c0_50, %c0_51, %c0_52] : memref<10x18x8xf32, #tpu.memory_space<vmem>>, vector<10x1x8xf32>
    tpu.vector_store %arg11[%c0_50, %c0_51, %c0_52], %50 {strides = array<i32>} : memref<10x18x8xf32, #tpu.memory_space<vmem>>, vector<10x1x8xf32>,
    %c0_53 = arith.constant 0 : index
    %c17_54 = arith.constant 17 : index
    %c0_55 = arith.constant 0 : index
    %52 = vector.load %arg11[%c0_53, %c17_54, %c0_55] : memref<10x18x8xf32, #tpu.memory_space<vmem>>, vector<10x1x8xf32>
    tpu.vector_store %arg11[%c0_53, %c17_54, %c0_55], %50 {strides = array<i32>} : memref<10x18x8xf32, #tpu.memory_space<vmem>>, vector<10x1x8xf32>,
    %53 = vector.shape_cast %49 : vector<160x8xf32> to vector<10x16x8xf32>
    %c0_56 = arith.constant 0 : index
    %c1_57 = arith.constant 1 : index
    %c0_58 = arith.constant 0 : index
    %54 = vector.load %arg11[%c0_56, %c1_57, %c0_58] : memref<10x18x8xf32, #tpu.memory_space<vmem>>, vector<10x16x8xf32>
    tpu.vector_store %arg11[%c0_56, %c1_57, %c0_58], %53 {strides = array<i32>} : memref<10x18x8xf32, #tpu.memory_space<vmem>>, vector<10x16x8xf32>,
    %c0_i32_59 = arith.constant 0 : i32
    %55 = arith.cmpi eq, %arg1, %c0_i32_59 : i32
    %56 = arith.extui %55 : i1 to i32
    %c0_i32_60 = arith.constant 0 : i32
    %57 = arith.cmpi ne, %56, %c0_i32_60 : i32
    scf.if %57 {
      %cst_105 = arith.constant 0.000000e+00 : f32
      %96 = vector.broadcast %cst_105 : f32 to vector<1x18x8xf32>
      %c0_106 = arith.constant 0 : index
      %c0_107 = arith.constant 0 : index
      %c0_108 = arith.constant 0 : index
      %97 = vector.load %arg11[%c0_106, %c0_107, %c0_108] : memref<10x18x8xf32, #tpu.memory_space<vmem>>, vector<1x18x8xf32>
      tpu.vector_store %arg11[%c0_106, %c0_107, %c0_108], %96 {strides = array<i32>} : memref<10x18x8xf32, #tpu.memory_space<vmem>>, vector<1x18x8xf32>,
    } else {
    }
    %c1_i32_61 = arith.constant 1 : i32
    %58 = arith.cmpi eq, %arg1, %c1_i32_61 : i32
    %59 = arith.extui %58 : i1 to i32
    %c0_i32_62 = arith.constant 0 : i32
    %60 = arith.cmpi ne, %59, %c0_i32_62 : i32
    scf.if %60 {
      %cst_105 = arith.constant 0.000000e+00 : f32
      %96 = vector.broadcast %cst_105 : f32 to vector<1x18x8xf32>
      %c9 = arith.constant 9 : index
      %c0_106 = arith.constant 0 : index
      %c0_107 = arith.constant 0 : index
      %97 = vector.load %arg11[%c9, %c0_106, %c0_107] : memref<10x18x8xf32, #tpu.memory_space<vmem>>, vector<1x18x8xf32>
      tpu.vector_store %arg11[%c9, %c0_106, %c0_107], %96 {strides = array<i32>} : memref<10x18x8xf32, #tpu.memory_space<vmem>>, vector<1x18x8xf32>,
    } else {
    }
    %c0_63 = arith.constant 0 : index
    %c0_64 = arith.constant 0 : index
    %c0_65 = arith.constant 0 : index
    %61 = vector.load %arg11[%c0_63, %c0_64, %c0_65] : memref<10x18x8xf32, #tpu.memory_space<vmem>>, vector<8x16x8xf32>
    %62 = arith.truncf %61 : vector<8x16x8xf32> to vector<8x16x8xbf16>
    %c0_66 = arith.constant 0 : index
    %c1_67 = arith.constant 1 : index
    %c0_68 = arith.constant 0 : index
    %63 = vector.load %arg11[%c0_66, %c1_67, %c0_68] : memref<10x18x8xf32, #tpu.memory_space<vmem>>, vector<8x16x8xf32>
    %64 = arith.truncf %63 : vector<8x16x8xf32> to vector<8x16x8xbf16>
    %c0_69 = arith.constant 0 : index
    %c2_70 = arith.constant 2 : index
    %c0_71 = arith.constant 0 : index
    %65 = vector.load %arg11[%c0_69, %c2_70, %c0_71] : memref<10x18x8xf32, #tpu.memory_space<vmem>>, vector<8x16x8xf32>
    %66 = arith.truncf %65 : vector<8x16x8xf32> to vector<8x16x8xbf16>
    %c1_72 = arith.constant 1 : index
    %c0_73 = arith.constant 0 : index
    %c0_74 = arith.constant 0 : index
    %67 = vector.load %arg11[%c1_72, %c0_73, %c0_74] : memref<10x18x8xf32, #tpu.memory_space<vmem>>, vector<8x16x8xf32>
    %68 = arith.truncf %67 : vector<8x16x8xf32> to vector<8x16x8xbf16>
    %c1_75 = arith.constant 1 : index
    %c1_76 = arith.constant 1 : index
    %c0_77 = arith.constant 0 : index
    %69 = vector.load %arg11[%c1_75, %c1_76, %c0_77] : memref<10x18x8xf32, #tpu.memory_space<vmem>>, vector<8x16x8xf32>
    %70 = arith.truncf %69 : vector<8x16x8xf32> to vector<8x16x8xbf16>
    %c1_78 = arith.constant 1 : index
    %c2_79 = arith.constant 2 : index
    %c0_80 = arith.constant 0 : index
    %71 = vector.load %arg11[%c1_78, %c2_79, %c0_80] : memref<10x18x8xf32, #tpu.memory_space<vmem>>, vector<8x16x8xf32>
    %72 = arith.truncf %71 : vector<8x16x8xf32> to vector<8x16x8xbf16>
    %c2_81 = arith.constant 2 : index
    %c0_82 = arith.constant 0 : index
    %c0_83 = arith.constant 0 : index
    %73 = vector.load %arg11[%c2_81, %c0_82, %c0_83] : memref<10x18x8xf32, #tpu.memory_space<vmem>>, vector<8x16x8xf32>
    %74 = arith.truncf %73 : vector<8x16x8xf32> to vector<8x16x8xbf16>
    %c2_84 = arith.constant 2 : index
    %c1_85 = arith.constant 1 : index
    %c0_86 = arith.constant 0 : index
    %75 = vector.load %arg11[%c2_84, %c1_85, %c0_86] : memref<10x18x8xf32, #tpu.memory_space<vmem>>, vector<8x16x8xf32>
    %76 = arith.truncf %75 : vector<8x16x8xf32> to vector<8x16x8xbf16>
    %c2_87 = arith.constant 2 : index
    %c2_88 = arith.constant 2 : index
    %c0_89 = arith.constant 0 : index
    %77 = vector.load %arg11[%c2_87, %c2_88, %c0_89] : memref<10x18x8xf32, #tpu.memory_space<vmem>>, vector<8x16x8xf32>
    %78 = arith.truncf %77 : vector<8x16x8xf32> to vector<8x16x8xbf16>
    %79 = tpu.concatenate %62, %64, %66, %68, %70, %72, %74, %76, %78 in 2 : vector<8x16x8xbf16>, vector<8x16x8xbf16>, vector<8x16x8xbf16>, vector<8x16x8xbf16>, vector<8x16x8xbf16>, vector<8x16x8xbf16>, vector<8x16x8xbf16>, vector<8x16x8xbf16>, vector<8x16x8xbf16> -> vector<8x16x72xbf16>
    %80 = vector.shape_cast %79 : vector<8x16x72xbf16> to vector<128x72xbf16>
    %c0_90 = arith.constant 0 : index
    %c0_91 = arith.constant 0 : index
    %81 = vector.load %arg4[%c0_90, %c0_91] : memref<72x8xbf16, #tpu.memory_space<vmem>>, vector<72x8xbf16>
    %cst_92 = arith.constant dense<0.000000e+00> : vector<128x8xf32>
    %82 = tpu.matmul %80, %81, %cst_92 {dimension_numbers = #tpu.dot_dimension_numbers<[1], [0], [0], [1], [0, 0, 1, 1], [], []>} : vector<128x72xbf16>, vector<72x8xbf16>, vector<128x8xf32> -> vector<128x8xf32>
    %c2_93 = arith.constant 2 : index
    %c1_94 = arith.constant 1 : index
    %c0_95 = arith.constant 0 : index
    %83 = vector.load %arg10[%c2_93, %c1_94, %c0_95] : memref<12x18x8xf32, #tpu.memory_space<vmem>>, vector<8x16x8xf32>
    %84 = vector.shape_cast %83 : vector<8x16x8xf32> to vector<128x8xf32>
    %c0_96 = arith.constant 0 : index
    %c0_97 = arith.constant 0 : index
    %85 = vector.load %arg7[%c0_96, %c0_97] : memref<1x8xf32, #tpu.memory_space<vmem>>, vector<1x8xf32>
    %86 = vector.broadcast %85 : vector<1x8xf32> to vector<128x8xf32>
    %87 = arith.mulf %82, %86 : vector<128x8xf32>
    %c0_98 = arith.constant 0 : index
    %c0_99 = arith.constant 0 : index
    %88 = vector.load %arg8[%c0_98, %c0_99] : memref<1x8xf32, #tpu.memory_space<vmem>>, vector<1x8xf32>
    %89 = vector.broadcast %88 : vector<1x8xf32> to vector<128x8xf32>
    %90 = arith.addf %87, %89 : vector<128x8xf32>
    %91 = arith.addf %90, %84 : vector<128x8xf32>
    %cst_100 = arith.constant 0.000000e+00 : f32
    %92 = vector.broadcast %cst_100 : f32 to vector<128x8xf32>
    %93 = arith.maximumf %91, %92 : vector<128x8xf32>
    %94 = vector.shape_cast %93 : vector<128x8xf32> to vector<1x8x16x8xf32>
    %c0_101 = arith.constant 0 : index
    %c0_102 = arith.constant 0 : index
    %c0_103 = arith.constant 0 : index
    %c0_104 = arith.constant 0 : index
    %95 = vector.load %arg9[%c0_101, %c0_102, %c0_103, %c0_104] : memref<1x8x16x8xf32, #tpu.memory_space<vmem>>, vector<1x8x16x8xf32>
    tpu.vector_store %arg9[%c0_101, %c0_102, %c0_103, %c0_104], %94 {strides = array<i32>} : memref<1x8x16x8xf32, #tpu.memory_space<vmem>>, vector<1x8x16x8xf32>,
    return
  }
  func.func @transform_0(%arg0: i32, %arg1: i32) -> (i32, i32, i32, i32) {
    %c0_i32 = arith.constant 0 : i32
    %c0_i32_0 = arith.constant 0 : i32
    %c0_i32_1 = arith.constant 0 : i32
    %c0_i32_2 = arith.constant 0 : i32
    return %arg0, %c0_i32, %c0_i32_0, %c0_i32_1 : i32, i32, i32, i32
  }
  func.func @transform_1(%arg0: i32, %arg1: i32) -> (i32, i32) {
    %c0_i32 = arith.constant 0 : i32
    %c0_i32_0 = arith.constant 0 : i32
    %c0_i32_1 = arith.constant 0 : i32
    return %c0_i32, %c0_i32_0 : i32, i32
  }
  func.func @transform_2(%arg0: i32, %arg1: i32) -> (i32, i32) {
    %c0_i32 = arith.constant 0 : i32
    %c0_i32_0 = arith.constant 0 : i32
    %c0_i32_1 = arith.constant 0 : i32
    return %c0_i32, %c0_i32_0 : i32, i32
  }
  func.func @transform_3(%arg0: i32, %arg1: i32) -> (i32, i32) {
    %c0_i32 = arith.constant 0 : i32
    %c0_i32_0 = arith.constant 0 : i32
    %c0_i32_1 = arith.constant 0 : i32
    return %c0_i32, %c0_i32_0 : i32, i32
  }
  func.func @transform_4(%arg0: i32, %arg1: i32) -> (i32, i32) {
    %c0_i32 = arith.constant 0 : i32
    %c0_i32_0 = arith.constant 0 : i32
    %c0_i32_1 = arith.constant 0 : i32
    return %c0_i32, %c0_i32_0 : i32, i32
  }
  func.func @transform_5(%arg0: i32, %arg1: i32) -> (i32, i32) {
    %c0_i32 = arith.constant 0 : i32
    %c0_i32_0 = arith.constant 0 : i32
    %c0_i32_1 = arith.constant 0 : i32
    return %c0_i32, %c0_i32_0 : i32, i32
  }
  func.func @transform_6(%arg0: i32, %arg1: i32) -> (i32, i32) {
    %c0_i32 = arith.constant 0 : i32
    %c0_i32_0 = arith.constant 0 : i32
    %c0_i32_1 = arith.constant 0 : i32
    return %c0_i32, %c0_i32_0 : i32, i32
  }
  func.func @transform_7(%arg0: i32, %arg1: i32) -> (i32, i32, i32, i32) {
    %c0_i32 = arith.constant 0 : i32
    %c0_i32_0 = arith.constant 0 : i32
    %c0_i32_1 = arith.constant 0 : i32
    return %arg0, %arg1, %c0_i32, %c0_i32_0 : i32, i32, i32, i32
  }
}

</mosaic_0001>

<bundles_post_ra>
// kernel: tpu_custom_call.1
= control target key start
LH: loop header
LB: loop body
LE: loop exit
PB: predicated region body
PF: predicated region fallthrough
CT: control target
= control target key end

     0   :  { %s2624_s24 = smov 0   ;;  %s2626_s25 = smov 0   ;;  %s3416_s0 = inlined_call_operand.vmem [shape: f32[2,16,16,8], index: 0, kind: input, shape index: {}]   ;;  %s3417_s1 = inlined_call_operand.vmem [shape: bf16[72,8], index: 1, kind: input, shape index: {}]   ;;  %s3418_s2 = inlined_call_operand.vmem [shape: bf16[72,8], index: 2, kind: input, shape index: {}]   ;;  %s3419_s3 = inlined_call_operand.vmem [shape: f32[1,8], index: 3, kind: input, shape index: {}]   ;;  %s3420_s4 = inlined_call_operand.vmem [shape: f32[1,8], index: 4, kind: input, shape index: {}]   ;;  %s3421_s5 = inlined_call_operand.vmem [shape: f32[1,8], index: 5, kind: input, shape index: {}]   ;;  %s3422_s6 = inlined_call_operand.vmem [shape: f32[1,8], index: 6, kind: input, shape index: {}]   ;;  %s3423_s7 = inlined_call_operand.vmem [shape: f32[2,16,16,8], index: 7, kind: output, shape index: {}]  }
   0x1   :  { %s2628_s26 = smov 0   ;;  %s2630_s27 = smov 0  }
   0x2   :  { %s2632_s28 = smov 0  }
   0x3 LB: > { %s26_s29 = sadd.s32 1, %s2561_s26  ;;  %s29_s30 = sadd.s32 1, %s2565_s27  ;;  %s2569_s28 = sphi %s2632_s28, %s17_s28   ;;  %s2565_s27 = sphi %s2630_s27, %s3427_s27   ;;  %s2561_s26 = sphi %s2628_s26, %s3426_s26   ;;  %s2557_s25 = sphi %s2626_s25, %s3425_s25   ;;  %s2553_s24 = sphi %s2624_s24, %s3424_s24  }
   0x4   : > { %p27_p0 = scmp.ge.s32.totalorder %s26_s29, 2  ;;  %p2322_p1 = scmp.ge.s32.totalorder %s2569_s28, 1 }
   0x5   : > { %p251_p2 = scmp.lt.s32.totalorder %s2569_s28, 5 }
   0x6   : > { %s3429_s29 = smov (%p27_p0, %s26_s29), 0  ;;  %s3431_s30 = smov (!%p27_p0, %s29_s30), %s2565_s27 }
   0x7   : > { %p252_p3 = pnand %p2322_p1, %p251_p2  ;;  %p31_p4 = scmp.ge.s32.totalorder %s3431_s30, 2 }
   0x8   : > { %p288_p5 = scmp.lt.s32.totalorder (!%p252_p3), %s2557_s25, 1  ;;  %s2660_s8 = sshll.u32 (!%p252_p3), %s2553_s24, 3 }
   0x9   : > { %s3433_s30 = smov (%p31_p4, %s3431_s30), 0  ;;  %255 = sbr.rel (%p252_p3) target bundleno = 1019 (0x3fb), region = 48 }
   0xa   : > { %p296_p6 = scmp.lt.s32.totalorder (!%p252_p3), %s2660_s8, 15  ;;  %s2380_s9 = sshll.u32 (!%p252_p3), %s2553_s24, 7 }
   0xb   : > { %p2331_p7 = scmp.ne.s32.totalorder (!%p252_p3), %s2553_s24, 0 }
   0xe   : > { %vm306_vm0 = vcmask 57344   ;;  %v2571_v0 = vmov 0.0   ;;  %s3435_s25 = smov (!%p288_p5, %s2557_s25), 1  ;;  %vm350_vm1 = vcmask 64512  }
   0xf   : > { %307 = vst.msk [vmem:[#allocation2] sm:$0x1] %vm306_vm0, %v2571_v0  ;;  %308 = vst.msk [vmem:[#allocation2 + $0x18] sm:$0x1] %vm306_vm0, %v2571_v0  ;;  %s297_s10 = scalar_select %p296_p6, %s2660_s8, 15 }
  0x10   : > { %309 = vst.msk [vmem:[#allocation2 + $0x30] sm:$0x1] %vm306_vm0, %v2571_v0  ;;  %310 = vst.msk [vmem:[#allocation2 + $0x48] sm:$0x1] %vm306_vm0, %v2571_v0  ;;  %s2379_s11 = sshll.u32 %s3435_s25, 8  ;;  %s2327_s12 = sshll.u32 %s3435_s25, 5 }
  0x11   : > { %311 = vst.msk [vmem:[#allocation2 + $0x60] sm:$0x1] %vm306_vm0, %v2571_v0  ;;  %312 = vst.msk [vmem:[#allocation2 + $0x78] sm:$0x1] %vm306_vm0, %v2571_v0  ;;  %s2719_s15 = scalar_lea.vmem %s3416_s0, %s2379_s11  ;;  %s2326_s16 = sshll.u32 %s297_s10, 1 }
  0x12   : > { %313 = vst.msk [vmem:[#allocation2 + $0x90] sm:$0x1] %vm306_vm0, %v2571_v0  ;;  %314 = vst.msk [vmem:[#allocation2 + $0xa8] sm:$0x1] %vm306_vm0, %v2571_v0  ;;  %s300_s17 = sadd.s32 %s2327_s12, %s2326_s16  ;;  %s2722_s18 = scalar_lea.vmem %s2719_s15, %s2380_s9 }
  0x13   : > { %315 = vst.msk [vmem:[#allocation2 + $0xc0] sm:$0x1] %vm306_vm0, %v2571_v0  ;;  %316 = vst.msk [vmem:[#allocation2 + $0xd8] sm:$0x1] %vm306_vm0, %v2571_v0  ;;  %s2328_s19 = sshll.u32 %s300_s17, 3  ;;  %v333_v1 = vld [vmem:[%s2722_s18] sm:$0xff] }
  0x14   : > { %317 = vst.msk [vmem:[#allocation2 + $0xf0] sm:$0x1] %vm306_vm0, %v2571_v0  ;;  %318 = vst.msk [vmem:[#allocation2 + $0x108] sm:$0x1] %vm306_vm0, %v2571_v0  ;;  %v334_v2 = vld [vmem:[%s2722_s18 + $0x8] sm:$0xff]  ;;  %v335_v3 = vld [vmem:[%s2722_s18 + $0x10] sm:$0xff]  ;;  %s2730_s22 = scalar_lea.vmem %s3423_s7, %s2328_s19 }
  0x15   : > { %319 = vst.msk [vmem:[#allocation2 + $0x11] sm:$0x1] %vm306_vm0, %v2571_v0  ;;  %320 = vst.msk [vmem:[#allocation2 + $0x29] sm:$0x1] %vm306_vm0, %v2571_v0  ;;  %v336_v4 = vld [vmem:[%s2722_s18 + $0x18] sm:$0xff]  ;;  %v337_v5 = vld [vmem:[%s2722_s18 + $0x20] sm:$0xff] }
  0x16   : > { %321 = vst.msk [vmem:[#allocation2 + $0x41] sm:$0x1] %vm306_vm0, %v2571_v0  ;;  %322 = vst.msk [vmem:[#allocation2 + $0x59] sm:$0x1] %vm306_vm0, %v2571_v0  ;;  %v338_v6 = vld [vmem:[%s2722_s18 + $0x28] sm:$0xff]  ;;  %v339_v7 = vld [vmem:[%s2722_s18 + $0x30] sm:$0xff] }
  0x17   : > { %323 = vst.msk [vmem:[#allocation2 + $0x71] sm:$0x1] %vm306_vm0, %v2571_v0  ;;  %324 = vst.msk [vmem:[#allocation2 + $0x89] sm:$0x1] %vm306_vm0, %v2571_v0  ;;  %v340_v8 = vld [vmem:[%s2722_s18 + $0x38] sm:$0xff]  ;;  %v341_v9 = vld [vmem:[%s2722_s18 + $0x40] sm:$0xff] }
  0x18   : > { %325 = vst.msk [vmem:[#allocation2 + $0xa1] sm:$0x1] %vm306_vm0, %v2571_v0  ;;  %326 = vst.msk [vmem:[#allocation2 + $0xb9] sm:$0x1] %vm306_vm0, %v2571_v0  ;;  %v342_v10 = vld [vmem:[%s2722_s18 + $0x48] sm:$0xff]  ;;  %v343_v11 = vld [vmem:[%s2722_s18 + $0x50] sm:$0xff] }
  0x19   : > { %327 = vst.msk [vmem:[#allocation2 + $0xd1] sm:$0x1] %vm306_vm0, %v2571_v0  ;;  %328 = vst.msk [vmem:[#allocation2 + $0xe9] sm:$0x1] %vm306_vm0, %v2571_v0  ;;  %v344_v12 = vld [vmem:[%s2722_s18 + $0x58] sm:$0xff]  ;;  %v345_v13 = vld [vmem:[%s2722_s18 + $0x60] sm:$0xff] }
  0x1a   : > { %329 = vst.msk [vmem:[#allocation2 + $0x101] sm:$0x1] %vm306_vm0, %v2571_v0  ;;  %330 = vst.msk [vmem:[#allocation2 + $0x119] sm:$0x1] %vm306_vm0, %v2571_v0  ;;  %v346_v14 = vld [vmem:[%s2722_s18 + $0x68] sm:$0xff]  ;;  %v347_v15 = vld [vmem:[%s2722_s18 + $0x70] sm:$0xff] }
  0x1b   : > { %351 = vst.msk [vmem:[#allocation2 + $0x31] sm:$0xff] %vm350_vm1, %v333_v1  ;;  %352 = vst.msk [vmem:[#allocation2 + $0x39] sm:$0xff] %vm350_vm1, %v334_v2  ;;  %v348_v16 = vld [vmem:[%s2722_s18 + $0x78] sm:$0xff] }
  0x1c   : > { %353 = vst.msk [vmem:[#allocation2 + $0x49] sm:$0xff] %vm350_vm1, %v335_v3  ;;  %354 = vst.msk [vmem:[#allocation2 + $0x51] sm:$0xff] %vm350_vm1, %v336_v4 }
  0x1d   : > { %355 = vst.msk [vmem:[#allocation2 + $0x61] sm:$0xff] %vm350_vm1, %v337_v5  ;;  %356 = vst.msk [vmem:[#allocation2 + $0x69] sm:$0xff] %vm350_vm1, %v338_v6 }
  0x1e   : > { %357 = vst.msk [vmem:[#allocation2 + $0x79] sm:$0xff] %vm350_vm1, %v339_v7  ;;  %358 = vst.msk [vmem:[#allocation2 + $0x81] sm:$0xff] %vm350_vm1, %v340_v8  ;;  %370 = sbr.rel (%p2331_p7) target bundleno = 39 (0x27), region = 52 }
  0x1f   : > { %359 = vst.msk [vmem:[#allocation2 + $0x91] sm:$0xff] %vm350_vm1, %v341_v9  ;;  %360 = vst.msk [vmem:[#allocation2 + $0x99] sm:$0xff] %vm350_vm1, %v342_v10 }
  0x20   : > { %361 = vst.msk [vmem:[#allocation2 + $0xa9] sm:$0xff] %vm350_vm1, %v343_v11  ;;  %362 = vst.msk [vmem:[#allocation2 + $0xb1] sm:$0xff] %vm350_vm1, %v344_v12 }
  0x21   : > { %363 = vst.msk [vmem:[#allocation2 + $0xc1] sm:$0xff] %vm350_vm1, %v345_v13  ;;  %364 = vst.msk [vmem:[#allocation2 + $0xc9] sm:$0xff] %vm350_vm1, %v346_v14 }
  0x22   : > { %365 = vst.msk [vmem:[#allocation2 + $0xd9] sm:$0xff] %vm350_vm1, %v347_v15  ;;  %366 = vst.msk [vmem:[#allocation2 + $0xe1] sm:$0xff] %vm350_vm1, %v348_v16 }
  0x23   : > { %vm373_vm2 = vcmask 58368   ;;  %v2572_v17 = vmov 0.0  }
  0x24   : > { %371 = vst.msk [vmem:[#allocation2] sm:$0xff] %vm350_vm1, %v2572_v17  ;;  %372 = vst.msk [vmem:[#allocation2 + $0x8] sm:$0xff] %vm350_vm1, %v2572_v17 }
  0x25   : > { %375 = vst.msk [vmem:[#allocation2 + $0x18] sm:$0xff] %vm350_vm1, %v2572_v17  ;;  %376 = vst.msk [vmem:[#allocation2 + $0x20] sm:$0xff] %vm350_vm1, %v2572_v17 }
  0x26   : > { %374 = vst.msk [vmem:[#allocation2 + $0x10] sm:$0x3] %vm373_vm2, %v2572_v17  ;;  %377 = vst.msk [vmem:[#allocation2 + $0x28] sm:$0x3] %vm373_vm2, %v2572_v17 }
  0x27 PF: > { %p2332_p8 = scmp.le.s32.totalorder %s2553_s24, 0 }
  0x28   : > { %s2333_s23 = sadd.s32 (!%p2332_p8), 4294967294, %s2660_s8 }
  0x29   : > { %381 = sbr.rel (%p2332_p8) target bundleno = 49 (0x31), region = 56  ;;  %s2334_s25 = sshll.u32 (!%p2332_p8), %s2333_s23, 4 }
  0x2a   : > { %s384_s9 = scalar_lea.vmem (!%p2332_p8), %s2719_s15, %s2334_s25 }
  0x2e   : > { %v385_v18 = vld [vmem:[%s384_s9] sm:$0xff]  ;;  %v386_v19 = vld [vmem:[%s384_s9 + $0x8] sm:$0xff]  ;;  %v387_v20 = vld [vmem:[%s384_s9 + $0x10] sm:$0xff] }
  0x2f   : > { %389 = vst.msk [vmem:[#allocation2 + $0x1] sm:$0xff] %vm350_vm1, %v385_v18  ;;  %390 = vst.msk [vmem:[#allocation2 + $0x9] sm:$0xff] %vm350_vm1, %v386_v19  ;;  %v388_v21 = vld [vmem:[%s384_s9 + $0x18] sm:$0xff] }
  0x30   : > { %391 = vst.msk [vmem:[#allocation2 + $0x19] sm:$0xff] %vm350_vm1, %v387_v20  ;;  %392 = vst.msk [vmem:[#allocation2 + $0x21] sm:$0xff] %vm350_vm1, %v388_v21 }
  0x31 PF: > { %p2335_p9 = scmp.ne.s32.totalorder %s2553_s24, 1 }
  0x33   : > { %396 = sbr.rel (%p2335_p9) target bundleno = 60 (0x3c), region = 60 }
  0x38   : > { %vm400_vm3 = vcmask 58368   ;;  %v2573_v22 = vmov 0.0  }
  0x39   : > { %398 = vst.msk [vmem:[#allocation2 + $0xf0] sm:$0xff] %vm350_vm1, %v2573_v22  ;;  %399 = vst.msk [vmem:[#allocation2 + $0xf8] sm:$0xff] %vm350_vm1, %v2573_v22 }
  0x3a   : > { %402 = vst.msk [vmem:[#allocation2 + $0x108] sm:$0xff] %vm350_vm1, %v2573_v22  ;;  %403 = vst.msk [vmem:[#allocation2 + $0x110] sm:$0xff] %vm350_vm1, %v2573_v22 }
  0x3b   : > { %401 = vst.msk [vmem:[#allocation2 + $0x100] sm:$0x3] %vm400_vm3, %v2573_v22  ;;  %404 = vst.msk [vmem:[#allocation2 + $0x118] sm:$0x3] %vm400_vm3, %v2573_v22 }
  0x3c PF: > { %p2336_p10 = scmp.ge.s32.totalorder %s2553_s24, 1 }
  0x3e   : > { %408 = sbr.rel (%p2336_p10) target bundleno = 70 (0x46), region = 64 }
  0x43   : > { %v2339_v23 = vld [vmem:[%s2722_s18 + $0x80] sm:$0xff]  ;;  %v2340_v24 = vld [vmem:[%s2722_s18 + $0x88] sm:$0xff]  ;;  %v2341_v25 = vld [vmem:[%s2722_s18 + $0x90] sm:$0xff] }
  0x44   : > { %417 = vst.msk [vmem:[#allocation2 + $0xf1] sm:$0xff] %vm350_vm1, %v2339_v23  ;;  %418 = vst.msk [vmem:[#allocation2 + $0xf9] sm:$0xff] %vm350_vm1, %v2340_v24  ;;  %v2342_v26 = vld [vmem:[%s2722_s18 + $0x98] sm:$0xff] }
  0x45   : > { %419 = vst.msk [vmem:[#allocation2 + $0x109] sm:$0xff] %vm350_vm1, %v2341_v25  ;;  %420 = vst.msk [vmem:[#allocation2 + $0x111] sm:$0xff] %vm350_vm1, %v2342_v26 }
  0x46 PF: > { %v481_v27 = vld [vmem:[#allocation2 + $0x2] sm:$0xff]  ;;  %v482_v28 = vld [vmem:[#allocation2 + $0xa] sm:$0xff]  ;;  %1357 = vst.msk [vmem:[#allocation3] sm:$0x1] %vm306_vm0, %v2571_v0  ;;  %1358 = vst.msk [vmem:[#allocation3 + $0x18] sm:$0x1] %vm306_vm0, %v2571_v0 }
  0x47   : > { %v451_v29 = vld [vmem:[#allocation2 + $0x1] sm:$0xff]  ;;  %1359 = vst.msk [vmem:[#allocation3 + $0x30] sm:$0x1] %vm306_vm0, %v2571_v0  ;;  %1360 = vst.msk [vmem:[#allocation3 + $0x48] sm:$0x1] %vm306_vm0, %v2571_v0  ;;  %v501_v30 = vpack.c.bf16 %v482_v28, %v481_v27  ;;  %v452_v31 = vld [vmem:[#allocation2 + $0x9] sm:$0xff] }
  0x48   : > { %1361 = vst.msk [vmem:[#allocation3 + $0x60] sm:$0x1] %vm306_vm0, %v2571_v0  ;;  %1362 = vst.msk [vmem:[#allocation3 + $0x78] sm:$0x1] %vm306_vm0, %v2571_v0  ;;  %v483_v32 = vld [vmem:[#allocation2 + $0x1a] sm:$0xff]  ;;  %v484_v33 = vld [vmem:[#allocation2 + $0x22] sm:$0xff]  ;;  %v471_v34 = vpack.c.bf16 %v452_v31, %v451_v29 }
  0x49   : > { %1363 = vst.msk [vmem:[#allocation3 + $0x90] sm:$0x1] %vm306_vm0, %v2571_v0  ;;  %1364 = vst.msk [vmem:[#allocation3 + $0xa8] sm:$0x1] %vm306_vm0, %v2571_v0  ;;  %v453_v35 = vld [vmem:[#allocation2 + $0x19] sm:$0xff]  ;;  %v454_v36 = vld [vmem:[#allocation2 + $0x21] sm:$0xff]  ;;  %v502_v37 = vpack.c.bf16 %v484_v33, %v483_v32 }
  0x4a   : > { %1365 = vst.msk [vmem:[#allocation3 + $0xc0] sm:$0x1] %vm306_vm0, %v2571_v0  ;;  %1366 = vst.msk [vmem:[#allocation3 + $0xd8] sm:$0x1] %vm306_vm0, %v2571_v0  ;;  %s2574_s8 = smov 16   ;;  %s2575_s10 = smov 8   ;;  %v472_v38 = vpack.c.bf16 %v454_v36, %v453_v35 }
  0x4b   : > { %1367 = vst.msk [vmem:[#allocation3 + $0x11] sm:$0x1] %vm306_vm0, %v2571_v0  ;;  %1368 = vst.msk [vmem:[#allocation3 + $0x29] sm:$0x1] %vm306_vm0, %v2571_v0  ;;  %732 = vrot.lane.b32.xlu1 %v501_v30, %s2574_s8  ;;  %702 = vrot.lane.b32.xlu0 %v471_v34, %s2575_s10  ;;  %v514_v39 = vld [vmem:[#allocation2 + $0x30] sm:$0xff]  ;;  %v515_v40 = vld [vmem:[#allocation2 + $0x38] sm:$0xff] }
  0x4c   : > { %1369 = vst.msk [vmem:[#allocation3 + $0x41] sm:$0x1] %vm306_vm0, %v2571_v0  ;;  %1370 = vst.msk [vmem:[#allocation3 + $0x59] sm:$0x1] %vm306_vm0, %v2571_v0  ;;  %v512_v41 = vld [vmem:[#allocation2 + $0x18] sm:$0xff]  ;;  %v513_v42 = vld [vmem:[#allocation2 + $0x20] sm:$0xff]  ;;  %v2834_v43 = vpack.c.bf16 %v515_v40, %v514_v39 }
  0x4d   : > { %1371 = vst.msk [vmem:[#allocation3 + $0x71] sm:$0x1] %vm306_vm0, %v2571_v0  ;;  %1372 = vst.msk [vmem:[#allocation3 + $0x89] sm:$0x1] %vm306_vm0, %v2571_v0  ;;  %v2837_v44 = vpack.c.bf16 %v513_v42, %v512_v41  ;;  %v544_v45 = vld [vmem:[#allocation2 + $0x31] sm:$0xff]  ;;  %v545_v46 = vld [vmem:[#allocation2 + $0x39] sm:$0xff] }
  0x4e   : > { %1373 = vst.msk [vmem:[#allocation3 + $0xa1] sm:$0x1] %vm306_vm0, %v2571_v0  ;;  %1374 = vst.msk [vmem:[#allocation3 + $0xb9] sm:$0x1] %vm306_vm0, %v2571_v0  ;;  %s2576_s11 = smov 24   ;;  %v563_v47 = vpack.c.bf16 %v545_v46, %v544_v45  ;;  %v574_v48 = vld [vmem:[#allocation2 + $0x32] sm:$0xff] }
  0x4f   : > { %1375 = vst.msk [vmem:[#allocation3 + $0xd1] sm:$0x1] %vm306_vm0, %v2571_v0  ;;  %1376 = vst.msk [vmem:[#allocation3 + $0xe9] sm:$0x1] %vm306_vm0, %v2571_v0  ;;  %734 = vrot.lane.b32.xlu1 %v502_v37, %s2574_s8  ;;  %704 = vrot.lane.b32.xlu0 %v472_v38, %s2575_s10  ;;  %v575_v49 = vld [vmem:[#allocation2 + $0x3a] sm:$0xff]  ;;  %s2577_s12 = smov 32  }
  0x50   : > { %v593_v50 = vpack.c.bf16 %v575_v49, %v574_v48  ;;  %v604_v51 = vld [vmem:[#allocation2 + $0x48] sm:$0xff]  ;;  %v605_v52 = vld [vmem:[#allocation2 + $0x50] sm:$0xff]  ;;  %vm1166_vm4 = vcmask 1043456   ;;  %s2578_s13 = smov 40   ;;  %v2521_v54 = vld [vmem:[%s3417_s1 + $0x20] ss:$0 sps:$4 sm:$0xff]  }
  0x51   : > { %v2846_v53 = vpack.c.bf16 %v605_v52, %v604_v51  ;;  %v634_v55 = vld [vmem:[#allocation2 + $0x49] sm:$0xff]  ;;  %v635_v56 = vld [vmem:[#allocation2 + $0x51] sm:$0xff]  ;;  %2466 = vmatprep.subr.msk.bf16.mxu0 %vm1166_vm4, %v2521_v54  ;;  %v1168_v57 = vsel %vm1166_vm4, %v2521_v54, 0  ;;  %s2579_s18 = smov 48   ;;  %s2580_s21 = smov 56   ;;  %v2525_v0 = vld [vmem:[%s3417_s1] sm:$0xff]  }
  0x52   : > { %v2522_v58 = vld [vmem:[%s3417_s1 + $0x18] sm:$0xff]   ;;  %2411 = vmatpush3.bf16.msra.mxu0 %v1168_v57  ;;  %v653_v59 = vpack.c.bf16 %v635_v56, %v634_v55  ;;  %v2523_v60 = vld [vmem:[%s3417_s1 + $0x10] sm:$0xff]   ;;  %v2524_v61 = vld [vmem:[%s3417_s1 + $0x8] sm:$0xff]   ;;  %s2581_s15 = smov 64   ;;  %vm962_vm5 = vcmask 130048   ;;  %vm983_vm6 = vcmask 195584  }
  0x53   : > { %764 = vrot.lane.b32.xlu1 %v2834_v43, %s2576_s11  ;;  %762 = vrot.lane.b32.xlu0 %v2837_v44, %s2576_s11  ;;  %v664_v62 = vld [vmem:[#allocation2 + $0x4a] sm:$0xff]  ;;  %v665_v63 = vld [vmem:[#allocation2 + $0x52] sm:$0xff]  ;;  %v518_v2 = vld [vmem:[#allocation2 + $0x60] sm:$0xff]  ;;  %vm1004_vm7 = vcmask 261120   ;;  %vm1025_vm8 = vcmask 326656   ;;  %vm1046_vm9 = vcmask 392192  }
  0x54   : > { %2412 = vmatprep.subr.bf16.mxu0 %v2522_v58  ;;  %v683_v1 = vpack.c.bf16 %v665_v63, %v664_v62  ;;  %v519_v3 = vld [vmem:[#allocation2 + $0x68] sm:$0xff]  ;;  %v608_v11 = vld [vmem:[#allocation2 + $0x78] sm:$0xff]  ;;  %v609_v12 = vld [vmem:[#allocation2 + $0x80] sm:$0xff]  ;;  %vm1067_vm10 = vcmask 457728   ;;  %vm1088_vm11 = vcmask 523264   ;;  %vm1145_vm12 = vcmask 588800  }
  0x55   : > { %v2877_v4 = vpack.c.bf16 %v519_v3, %v518_v2  ;;  %v548_v5 = vld [vmem:[#allocation2 + $0x61] sm:$0xff]  ;;  %v549_v6 = vld [vmem:[#allocation2 + $0x69] sm:$0xff]  ;;  %v2887_v13 = vpack.c.bf16 %v609_v12, %v608_v11  ;;  %v638_v14 = vld [vmem:[#allocation2 + $0x79] sm:$0xff] }
  0x56   : > { %2413 = vmatpush3.bf16.msra.mxu0 %v2522_v58  ;;  %v565_v7 = vpack.c.bf16 %v549_v6, %v548_v5  ;;  %v578_v8 = vld [vmem:[#allocation2 + $0x62] sm:$0xff]  ;;  %v579_v9 = vld [vmem:[#allocation2 + $0x6a] sm:$0xff]  ;;  %v668_v17 = vld [vmem:[#allocation2 + $0x7a] sm:$0xff] }
  0x57   : > { %794 = vrot.lane.b32.xlu1 %v563_v47, %s2577_s12  ;;  %792 = vrot.lane.b32.xlu0 %v472_v38, %s2577_s12  ;;  %v595_v10 = vpack.c.bf16 %v579_v9, %v578_v8  ;;  %v639_v15 = vld [vmem:[#allocation2 + $0x81] sm:$0xff]  ;;  %v522_v20 = vld [vmem:[#allocation2 + $0x90] sm:$0xff]  ;;  %v523_v21 = vld [vmem:[#allocation2 + $0x98] sm:$0xff] }
  0x58   : > { %2414 = vmatprep.subr.bf16.mxu0 %v2523_v60  ;;  %v655_v16 = vpack.c.bf16 %v639_v15, %v638_v14  ;;  %v669_v18 = vld [vmem:[#allocation2 + $0x82] sm:$0xff]  ;;  %v2901_v22 = vpack.c.bf16 %v523_v21, %v522_v20  ;;  %v552_v23 = vld [vmem:[#allocation2 + $0x91] sm:$0xff]  ;;  %v553_v24 = vld [vmem:[#allocation2 + $0x99] sm:$0xff] }
  0x59   : > { %v685_v19 = vpack.c.bf16 %v669_v18, %v668_v17  ;;  %v567_v25 = vpack.c.bf16 %v553_v24, %v552_v23  ;;  %v582_v26 = vld [vmem:[#allocation2 + $0x92] sm:$0xff]  ;;  %v583_v27 = vld [vmem:[#allocation2 + $0x9a] sm:$0xff]  ;;  %v612_v29 = vld [vmem:[#allocation2 + $0xa8] sm:$0xff] }
  0x5a   : > { %2415 = vmatpush3.bf16.msra.mxu0 %v2523_v60  ;;  %v597_v28 = vpack.c.bf16 %v583_v27, %v582_v26  ;;  %v613_v30 = vld [vmem:[#allocation2 + $0xb0] sm:$0xff]  ;;  %v526_v38 = vld [vmem:[#allocation2 + $0xc0] sm:$0xff]  ;;  %v527_v39 = vld [vmem:[#allocation2 + $0xc8] sm:$0xff] }
  0x5b   : > { %824 = vrot.lane.b32.xlu1 %v593_v50, %s2578_s13  ;;  %822 = vrot.lane.b32.xlu0 %v502_v37, %s2578_s13  ;;  %v2911_v31 = vpack.c.bf16 %v613_v30, %v612_v29  ;;  %v642_v32 = vld [vmem:[#allocation2 + $0xa9] sm:$0xff]  ;;  %v643_v33 = vld [vmem:[#allocation2 + $0xb1] sm:$0xff]  ;;  %v2925_v40 = vpack.c.bf16 %v527_v39, %v526_v38  ;;  %v556_v41 = vld [vmem:[#allocation2 + $0xc1] sm:$0xff] }
  0x5c   : > { %2416 = vmatprep.subr.bf16.mxu0 %v2524_v61  ;;  %v657_v34 = vpack.c.bf16 %v643_v33, %v642_v32  ;;  %v672_v35 = vld [vmem:[#allocation2 + $0xaa] sm:$0xff]  ;;  %v673_v36 = vld [vmem:[#allocation2 + $0xb2] sm:$0xff]  ;;  %v586_v46 = vld [vmem:[#allocation2 + $0xc2] sm:$0xff] }
  0x5d   : > { %v687_v37 = vpack.c.bf16 %v673_v36, %v672_v35  ;;  %v557_v42 = vld [vmem:[#allocation2 + $0xc9] sm:$0xff]  ;;  %v616_v49 = vld [vmem:[#allocation2 + $0xd8] sm:$0xff]  ;;  %v647_v54 = vld [vmem:[#allocation2 + $0xe1] sm:$0xff] }
  0x5e   : > { %2417 = vmatpush3.bf16.msra.mxu0 %v2524_v61  ;;  %v569_v45 = vpack.c.bf16 %v557_v42, %v556_v41  ;;  %v646_v52 = vld [vmem:[#allocation2 + $0xd9] sm:$0xff]  ;;  %v677_v62 = vld [vmem:[#allocation2 + $0xe2] sm:$0xff]  ;;  %v530_v6 = vld [vmem:[#allocation2 + $0xf0] sm:$0xff] }
  0x5f   : > { %854 = vrot.lane.b32.xlu1 %v2846_v53, %s2579_s18  ;;  %852 = vrot.lane.b32.xlu0 %v2834_v43, %s2579_s18  ;;  %v659_v57 = vpack.c.bf16 %v647_v54, %v646_v52  ;;  %v676_v61 = vld [vmem:[#allocation2 + $0xda] sm:$0xff]  ;;  %v422_v5 = vld [vmem:[#allocation2 + $0x8] sm:$0xff]  ;;  %v560_v12 = vld [vmem:[#allocation2 + $0xf1] sm:$0xff] }
  0x60   : > { %2418 = vmatprep.subr.bf16.mxu0 %v2525_v0  ;;  %v421_v3 = vld [vmem:[#allocation2] sm:$0xff]  ;;  %v620_v30 = vld [vmem:[#allocation2 + $0x108] sm:$0xff]  ;;  %v621_v32 = vld [vmem:[#allocation2 + $0x110] sm:$0xff] }
  0x61   : > { %v441_v9 = vpack.c.bf16 %v422_v5, %v421_v3  ;;  %v561_v14 = vld [vmem:[#allocation2 + $0xf9] sm:$0xff]  ;;  %v631_v41 = vpack.c.bf16 %v621_v32, %v620_v30 }
  0x62   : > { %2419 = vmatpush3.bf16.msra.mxu0 %v2525_v0  ;;  %v689_v0 = vpack.c.bf16 %v677_v62, %v676_v61  ;;  %v571_v18 = vpack.c.bf16 %v561_v14, %v560_v12  ;;  %v591_v20 = vld [vmem:[#allocation2 + $0xfa] sm:$0xff] }
  0x63   : > { %884 = vrot.lane.b32.xlu1 %v653_v59, %s2580_s21  ;;  %882 = vrot.lane.b32.xlu0 %v563_v47, %s2580_s21 }
  0x67   : > { %706 = vrot.lane.b32.xlu1 %v563_v47, %s2575_s10  ;;  %912 = vrot.lane.b32.xlu0 %v593_v50, %s2581_s15  ;;  %v587_v47 = vld [vmem:[#allocation2 + $0xca] sm:$0xff] }
  0x68   : > { %v599_v48 = vpack.c.bf16 %v587_v47, %v586_v46  ;;  %v651_v46 = vld [vmem:[#allocation2 + $0x111] sm:$0xff] }
  0x6b   : > { %708 = vrot.lane.b32.xlu1 %v653_v59, %s2575_s10  ;;  %914 = vrot.lane.b32.xlu0 %v683_v1, %s2581_s15 }
  0x6f   : > { %738 = vrot.lane.b32.xlu1 %v683_v1, %s2574_s8  ;;  %736 = vrot.lane.b32.xlu0 %v593_v50, %s2574_s8  ;;  %v617_v50 = vld [vmem:[#allocation2 + $0xe0] sm:$0xff] }
  0x70   : > { %v2935_v51 = vpack.c.bf16 %v617_v50, %v616_v49 }
  0x73   : > { %768 = vrot.lane.b32.xlu1 %v2877_v4, %s2576_s11  ;;  %766 = vrot.lane.b32.xlu0 %v2846_v53, %s2576_s11 }
  0x77   : > { %798 = vrot.lane.b32.xlu1 %v565_v7, %s2577_s12  ;;  %796 = vrot.lane.b32.xlu0 %v653_v59, %s2577_s12 }
  0x7b   : > { %828 = vrot.lane.b32.xlu1 %v595_v10, %s2578_s13  ;;  %826 = vrot.lane.b32.xlu0 %v683_v1, %s2578_s13 }
  0x7f   : > { %858 = vrot.lane.b32.xlu1 %v2887_v13, %s2579_s18  ;;  %856 = vrot.lane.b32.xlu0 %v2877_v4, %s2579_s18 }
  0x83   : > { %888 = vrot.lane.b32.xlu1 %v655_v16, %s2580_s21  ;;  %886 = vrot.lane.b32.xlu0 %v565_v7, %s2580_s21 }
  0x87   : > { %710 = vrot.lane.b32.xlu1 %v565_v7, %s2575_s10  ;;  %916 = vrot.lane.b32.xlu0 %v595_v10, %s2581_s15  ;;  %v531_v7 = vld [vmem:[#allocation2 + $0xf8] sm:$0xff] }
  0x88   : > { %v541_v11 = vpack.c.bf16 %v531_v7, %v530_v6 }
  0x8b   : > { %712 = vrot.lane.b32.xlu1 %v655_v16, %s2575_s10  ;;  %918 = vrot.lane.b32.xlu0 %v685_v19, %s2581_s15 }
  0x8f   : > { %742 = vrot.lane.b32.xlu1 %v685_v19, %s2574_s8  ;;  %740 = vrot.lane.b32.xlu0 %v595_v10, %s2574_s8 }
  0x93   : > { %772 = vrot.lane.b32.xlu1 %v2901_v22, %s2576_s11  ;;  %770 = vrot.lane.b32.xlu0 %v2887_v13, %s2576_s11 }
  0x97   : > { %802 = vrot.lane.b32.xlu1 %v567_v25, %s2577_s12  ;;  %800 = vrot.lane.b32.xlu0 %v655_v16, %s2577_s12 }
  0x9b   : > { %832 = vrot.lane.b32.xlu1 %v597_v28, %s2578_s13  ;;  %830 = vrot.lane.b32.xlu0 %v685_v19, %s2578_s13  ;;  %v590_v19 = vld [vmem:[#allocation2 + $0xf2] sm:$0xff] }
  0x9f   : > { %862 = vrot.lane.b32.xlu1 %v2911_v31, %s2579_s18  ;;  %860 = vrot.lane.b32.xlu0 %v2901_v22, %s2579_s18 }
  0xa3   : > { %892 = vrot.lane.b32.xlu1 %v657_v34, %s2580_s21  ;;  %890 = vrot.lane.b32.xlu0 %v567_v25, %s2580_s21 }
  0xa7   : > { %714 = vrot.lane.b32.xlu1 %v567_v25, %s2575_s10  ;;  %920 = vrot.lane.b32.xlu0 %v597_v28, %s2581_s15 }
  0xab   : > { %716 = vrot.lane.b32.xlu1 %v657_v34, %s2575_s10  ;;  %922 = vrot.lane.b32.xlu0 %v687_v37, %s2581_s15 }
  0xaf   : > { %746 = vrot.lane.b32.xlu1 %v687_v37, %s2574_s8  ;;  %744 = vrot.lane.b32.xlu0 %v597_v28, %s2574_s8  ;;  %v601_v28 = vpack.c.bf16 %v591_v20, %v590_v19 }
  0xb3   : > { %776 = vrot.lane.b32.xlu1 %v2925_v40, %s2576_s11  ;;  %774 = vrot.lane.b32.xlu0 %v2911_v31, %s2576_s11 }
  0xb7   : > { %806 = vrot.lane.b32.xlu1 %v569_v45, %s2577_s12  ;;  %804 = vrot.lane.b32.xlu0 %v657_v34, %s2577_s12 }
  0xbb   : > { %836 = vrot.lane.b32.xlu1 %v599_v48, %s2578_s13  ;;  %834 = vrot.lane.b32.xlu0 %v687_v37, %s2578_s13 }
  0xbd   : > { %v733_v55 = vpop.permute.xlu1 %732  ;;  %v703_v56 = vpop.permute.xlu0 %702 }
  0xbe   : > { %v934_v16 = vsel %vm350_vm1, %v441_v9, %v703_v56  ;;  %v681_v56 = vld [vmem:[#allocation2 + $0x112] sm:$0xff] }
  0xbf   : > { %866 = vrot.lane.b32.xlu1 %v2935_v51, %s2579_s18  ;;  %864 = vrot.lane.b32.xlu0 %v2925_v40, %s2579_s18  ;;  %v964_v21 = vsel %vm962_vm5, %v934_v16, %v733_v55  ;;  %v680_v55 = vld [vmem:[#allocation2 + $0x10a] sm:$0xff] }
  0xc1   : > { %v735_v58 = vpop.permute.xlu1 %734  ;;  %v705_v59 = vpop.permute.xlu0 %704 }
  0xc2   : > { %v937_v24 = vsel %vm350_vm1, %v2837_v44, %v705_v59  ;;  %v691_v59 = vpack.c.bf16 %v681_v56, %v680_v55 }
  0xc3   : > { %896 = vrot.lane.b32.xlu1 %v659_v57, %s2580_s21  ;;  %894 = vrot.lane.b32.xlu0 %v569_v45, %s2580_s21  ;;  %v966_v33 = vsel %vm962_vm5, %v937_v24, %v735_v58 }
  0xc5   : > { %v765_v60 = vpop.permute.xlu1 %764  ;;  %v763_v63 = vpop.permute.xlu0 %762 }
  0xc6   : > { %v985_v25 = vsel %vm983_vm6, %v964_v21, %v763_v63  ;;  %v987_v35 = vsel %vm983_vm6, %v966_v33, %v765_v60 }
  0xc7   : > { %718 = vrot.lane.b32.xlu1 %v569_v45, %s2575_s10  ;;  %924 = vrot.lane.b32.xlu0 %v599_v48, %s2581_s15  ;;  %v650_v45 = vld [vmem:[#allocation2 + $0x109] sm:$0xff] }
  0xc8   : > { %v661_v54 = vpack.c.bf16 %v651_v46, %v650_v45 }
  0xc9   : > { %v795_v1 = vpop.permute.xlu1 %794  ;;  %v793_v2 = vpop.permute.xlu0 %792 }
  0xca   : > { %v1006_v27 = vsel %vm1004_vm7, %v985_v25, %v793_v2  ;;  %v1008_v38 = vsel %vm1004_vm7, %v987_v35, %v795_v1 }
  0xcb   : > { %720 = vrot.lane.b32.xlu1 %v659_v57, %s2575_s10  ;;  %926 = vrot.lane.b32.xlu0 %v689_v0, %s2581_s15 }
  0xcd   : > { %v825_v8 = vpop.permute.xlu1 %824  ;;  %v823_v10 = vpop.permute.xlu0 %822 }
  0xce   : > { %v1027_v29 = vsel %vm1025_vm8, %v1006_v27, %v823_v10  ;;  %v1029_v42 = vsel %vm1025_vm8, %v1008_v38, %v825_v8 }
  0xcf   : > { %750 = vrot.lane.b32.xlu1 %v689_v0, %s2574_s8  ;;  %748 = vrot.lane.b32.xlu0 %v599_v48, %s2574_s8 }
  0xd1   : > { %v855_v15 = vpop.permute.xlu1 %854  ;;  %v853_v17 = vpop.permute.xlu0 %852 }
  0xd2   : > { %v1048_v44 = vsel %vm1046_vm9, %v1027_v29, %v853_v17  ;;  %v1050_v47 = vsel %vm1046_vm9, %v1029_v42, %v855_v15 }
  0xd3   : > { %780 = vrot.lane.b32.xlu1 %v541_v11, %s2576_s11  ;;  %778 = vrot.lane.b32.xlu0 %v2935_v51, %s2576_s11 }
  0xd5   : > { %v885_v23 = vpop.permute.xlu1 %884  ;;  %v883_v26 = vpop.permute.xlu0 %882 }
  0xd6   : > { %v1069_v36 = vsel %vm1067_vm10, %v1048_v44, %v883_v26  ;;  %v1071_v49 = vsel %vm1067_vm10, %v1050_v47, %v885_v23 }
  0xd7   : > { %810 = vrot.lane.b32.xlu1 %v571_v18, %s2577_s12  ;;  %808 = vrot.lane.b32.xlu0 %v659_v57, %s2577_s12 }
  0xd9   : > { %v707_v34 = vpop.permute.xlu1 %706  ;;  %v913_v37 = vpop.permute.xlu0 %912 }
  0xda   : > { %v1090_v39 = vsel %vm1088_vm11, %v1069_v36, %v913_v37  ;;  %v940_v5 = vsel %vm350_vm1, %v2834_v43, %v707_v34 }
  0xdb   : > { %840 = vrot.lane.b32.xlu1 %v601_v28, %s2578_s13  ;;  %838 = vrot.lane.b32.xlu0 %v689_v0, %s2578_s13 }
  0xdc   : > { %2420 = vmatprep.mubr.msk.bf16.mxu0 %vm1145_vm12, %v1090_v39 }
  0xdd   : > { %v709_v48 = vpop.permute.xlu1 %708  ;;  %v915_v50 = vpop.permute.xlu0 %914 }
  0xde   : > { %v1092_v52 = vsel %vm1088_vm11, %v1071_v49, %v915_v50 }
  0xdf   : > { %870 = vrot.lane.b32.xlu1 %v631_v41, %s2579_s18  ;;  %868 = vrot.lane.b32.xlu0 %v541_v11, %s2579_s18  ;;  %v943_v11 = vsel %vm350_vm1, %v2846_v53, %v709_v48 }
  0xe0   : > { %2421 = vmatmul.mubr.msk.bf16.vlgmr.msra.gmra.mxu0 %vm1145_vm12, %v1092_v52 }
  0xe1   : > { %v739_v57 = vpop.permute.xlu1 %738  ;;  %v737_v58 = vpop.permute.xlu0 %736 }
  0xe2   : > { %v968_v6 = vsel %vm962_vm5, %v940_v5, %v737_v58  ;;  %v970_v14 = vsel %vm962_vm5, %v943_v11, %v739_v57 }
  0xe3   : > { %900 = vrot.lane.b32.xlu1 %v661_v54, %s2580_s21  ;;  %898 = vrot.lane.b32.xlu0 %v571_v18, %s2580_s21 }
  0xe5   : > { %v769_v60 = vpop.permute.xlu1 %768  ;;  %v767_v61 = vpop.permute.xlu0 %766 }
  0xe6   : > { %v989_v8 = vsel %vm983_vm6, %v968_v6, %v767_v61  ;;  %v991_v43 = vsel %vm983_vm6, %v970_v14, %v769_v60 }
  0xe7   : > { %930 = vrot.lane.b32.xlu1 %v691_v59, %s2581_s15  ;;  %928 = vrot.lane.b32.xlu0 %v601_v28, %s2581_s15 }
  0xe9   : > { %v799_v62 = vpop.permute.xlu1 %798  ;;  %v797_v63 = vpop.permute.xlu0 %796 }
  0xea   : > { %v1010_v10 = vsel %vm1004_vm7, %v989_v8, %v797_v63  ;;  %v1012_v19 = vsel %vm1004_vm7, %v991_v43, %v799_v62 }
  0xed   : > { %v829_v0 = vpop.permute.xlu1 %828  ;;  %v827_v1 = vpop.permute.xlu0 %826 }
  0xee   : > { %v1031_v12 = vsel %vm1025_vm8, %v1010_v10, %v827_v1  ;;  %v1033_v21 = vsel %vm1025_vm8, %v1012_v19, %v829_v0 }
  0xf1   : > { %v859_v2 = vpop.permute.xlu1 %858  ;;  %v857_v3 = vpop.permute.xlu0 %856 }
  0xf2   : > { %v1052_v15 = vsel %vm1046_vm9, %v1031_v12, %v857_v3  ;;  %v1054_v53 = vsel %vm1046_vm9, %v1033_v21, %v859_v2 }
  0xf5   : > { %v889_v7 = vpop.permute.xlu1 %888  ;;  %v887_v9 = vpop.permute.xlu0 %886 }
  0xf6   : > { %v1073_v17 = vsel %vm1067_vm10, %v1052_v15, %v887_v9  ;;  %v1075_v24 = vsel %vm1067_vm10, %v1054_v53, %v889_v7 }
  0xf9   : > { %v711_v16 = vpop.permute.xlu1 %710  ;;  %v917_v18 = vpop.permute.xlu0 %916 }
  0xfa   : > { %v1094_v20 = vsel %vm1088_vm11, %v1073_v17, %v917_v18  ;;  %v946_v37 = vsel %vm350_vm1, %v2877_v4, %v711_v16 }
  0xfb   : > { %2424 = vmatprep.mubr.msk.bf16.mxu0 %vm1145_vm12, %v1094_v20 }
  0xfd   : > { %v713_v23 = vpop.permute.xlu1 %712  ;;  %v919_v25 = vpop.permute.xlu0 %918 }
  0xfe   : > { %v1096_v26 = vsel %vm1088_vm11, %v1075_v24, %v919_v25  ;;  %v949_v46 = vsel %vm350_vm1, %v2887_v13, %v713_v23 }
  0xff   : > { %2425 = vmatmul.mubr.msk.bf16.gmra.mxu0 %vm1145_vm12, %v1096_v26 }
 0x101   : > { %v743_v27 = vpop.permute.xlu1 %742  ;;  %v741_v28 = vpop.permute.xlu0 %740 }
 0x102   : > { %v972_v38 = vsel %vm962_vm5, %v946_v37, %v741_v28  ;;  %v974_v48 = vsel %vm962_vm5, %v949_v46, %v743_v27 }
 0x105   : > { %v773_v29 = vpop.permute.xlu1 %772  ;;  %v771_v30 = vpop.permute.xlu0 %770 }
 0x106   : > { %v993_v41 = vsel %vm983_vm6, %v972_v38, %v771_v30  ;;  %v995_v4 = vsel %vm983_vm6, %v974_v48, %v773_v29 }
 0x109   : > { %v803_v32 = vpop.permute.xlu1 %802  ;;  %v801_v33 = vpop.permute.xlu0 %800 }
 0x10a   : > { %v1014_v45 = vsel %vm1004_vm7, %v993_v41, %v801_v33  ;;  %v1016_v55 = vsel %vm1004_vm7, %v995_v4, %v803_v32 }
 0x10d   : > { %v833_v44 = vpop.permute.xlu1 %832  ;;  %v831_v34 = vpop.permute.xlu0 %830 }
 0x10e   : > { %v1035_v47 = vsel %vm1025_vm8, %v1014_v45, %v831_v34  ;;  %v1037_v57 = vsel %vm1025_vm8, %v1016_v55, %v833_v44 }
 0x111   : > { %v863_v35 = vpop.permute.xlu1 %862  ;;  %v861_v36 = vpop.permute.xlu0 %860 }
 0x112   : > { %v1056_v49 = vsel %vm1046_vm9, %v1035_v47, %v861_v36  ;;  %v1058_v13 = vsel %vm1046_vm9, %v1037_v57, %v863_v35 }
 0x115   : > { %v893_v39 = vpop.permute.xlu1 %892  ;;  %v891_v42 = vpop.permute.xlu0 %890 }
 0x116   : > { %v1077_v52 = vsel %vm1067_vm10, %v1056_v49, %v891_v42  ;;  %v1079_v59 = vsel %vm1067_vm10, %v1058_v13, %v893_v39 }
 0x119   : > { %v715_v50 = vpop.permute.xlu1 %714  ;;  %v921_v54 = vpop.permute.xlu0 %920 }
 0x11a   : > { %v1098_v56 = vsel %vm1088_vm11, %v1077_v52, %v921_v54  ;;  %v952_v9 = vsel %vm350_vm1, %v2901_v22, %v715_v50 }
 0x11b   : > { %2428 = vmatprep.mubr.msk.bf16.mxu0 %vm1145_vm12, %v1098_v56 }
 0x11d   : > { %v717_v58 = vpop.permute.xlu1 %716  ;;  %v923_v60 = vpop.permute.xlu0 %922 }
 0x11e   : > { %v1100_v61 = vsel %vm1088_vm11, %v1079_v59, %v923_v60  ;;  %v955_v16 = vsel %vm350_vm1, %v2911_v31, %v717_v58  ;;  %v3065_v60 = vld [vmem:[%s3419_s3] ss:$0 sm:$0xff] }
 0x11f   : > { %2429 = vmatmul.mubr.msk.bf16.gmra.mxu0 %vm1145_vm12, %v1100_v61 }
 0x121   : > { %v747_v62 = vpop.permute.xlu1 %746  ;;  %v745_v63 = vpop.permute.xlu0 %744 }
 0x122   : > { %v976_v10 = vsel %vm962_vm5, %v952_v9, %v745_v63  ;;  %v978_v17 = vsel %vm962_vm5, %v955_v16, %v747_v62  ;;  %v3070_v62 = vld [vmem:[%s3420_s4] ss:$0 sm:$0xff] }
 0x125   : > { %v777_v0 = vpop.permute.xlu1 %776  ;;  %v775_v1 = vpop.permute.xlu0 %774 }
 0x126   : > { %v997_v12 = vsel %vm983_vm6, %v976_v10, %v775_v1  ;;  %v999_v22 = vsel %vm983_vm6, %v978_v17, %v777_v0 }
 0x129   : > { %v807_v2 = vpop.permute.xlu1 %806  ;;  %v805_v3 = vpop.permute.xlu0 %804 }
 0x12a   : > { %v1018_v15 = vsel %vm1004_vm7, %v997_v12, %v805_v3  ;;  %v1020_v53 = vsel %vm1004_vm7, %v999_v22, %v807_v2 }
 0x12d   : > { %v837_v5 = vpop.permute.xlu1 %836  ;;  %v835_v6 = vpop.permute.xlu0 %834 }
 0x12e   : > { %v1039_v43 = vsel %vm1025_vm8, %v1018_v15, %v835_v6  ;;  %v1041_v24 = vsel %vm1025_vm8, %v1020_v53, %v837_v5 }
 0x131   : > { %v867_v7 = vpop.permute.xlu1 %866  ;;  %v865_v8 = vpop.permute.xlu0 %864 }
 0x132   : > { %v1060_v18 = vsel %vm1046_vm9, %v1039_v43, %v865_v8  ;;  %v1062_v31 = vsel %vm1046_vm9, %v1041_v24, %v867_v7 }
 0x135   : > { %v897_v11 = vpop.permute.xlu1 %896  ;;  %v895_v14 = vpop.permute.xlu0 %894 }
 0x136   : > { %v1081_v20 = vsel %vm1067_vm10, %v1060_v18, %v895_v14  ;;  %v1083_v26 = vsel %vm1067_vm10, %v1062_v31, %v897_v11 }
 0x139   : > { %v719_v19 = vpop.permute.xlu1 %718  ;;  %v925_v21 = vpop.permute.xlu0 %924 }
 0x13a   : > { %v1102_v23 = vsel %vm1088_vm11, %v1081_v20, %v925_v21  ;;  %v958_v41 = vsel %vm350_vm1, %v2925_v40, %v719_v19 }
 0x13b   : > { %2432 = vmatprep.mubr.msk.bf16.mxu0 %vm1145_vm12, %v1102_v23 }
 0x13d   : > { %v721_v25 = vpop.permute.xlu1 %720  ;;  %v927_v27 = vpop.permute.xlu0 %926 }
 0x13e   : > { %v1104_v28 = vsel %vm1088_vm11, %v1083_v26, %v927_v27  ;;  %v961_v39 = vsel %vm350_vm1, %v2935_v51, %v721_v25 }
 0x13f   : > { %2433 = vmatmul.mubr.msk.bf16.gmra.mxu0 %vm1145_vm12, %v1104_v28 }
 0x141   : > { %v751_v29 = vpop.permute.xlu1 %750  ;;  %v749_v30 = vpop.permute.xlu0 %748 }
 0x142   : > { %v982_v42 = vsel %vm962_vm5, %v961_v39, %v751_v29  ;;  %v980_v45 = vsel %vm962_vm5, %v958_v41, %v749_v30 }
 0x145   : > { %v781_v32 = vpop.permute.xlu1 %780  ;;  %v779_v33 = vpop.permute.xlu0 %778 }
 0x146   : > { %v1003_v46 = vsel %vm983_vm6, %v982_v42, %v781_v32  ;;  %v1001_v48 = vsel %vm983_vm6, %v980_v45, %v779_v33 }
 0x149   : > { %v811_v44 = vpop.permute.xlu1 %810  ;;  %v809_v34 = vpop.permute.xlu0 %808 }
 0x14a   : > { %v1024_v49 = vsel %vm1004_vm7, %v1003_v46, %v811_v44  ;;  %v1022_v4 = vsel %vm1004_vm7, %v1001_v48, %v809_v34 }
 0x14d   : > { %v841_v35 = vpop.permute.xlu1 %840  ;;  %v839_v36 = vpop.permute.xlu0 %838 }
 0x14e   : > { %v1045_v52 = vsel %vm1025_vm8, %v1024_v49, %v841_v35  ;;  %v1043_v51 = vsel %vm1025_vm8, %v1022_v4, %v839_v36 }
 0x151   : > { %v871_v37 = vpop.permute.xlu1 %870  ;;  %v869_v38 = vpop.permute.xlu0 %868 }
 0x152   : > { %v1066_v40 = vsel %vm1046_vm9, %v1045_v52, %v871_v37  ;;  %v1064_v54 = vsel %vm1046_vm9, %v1043_v51, %v869_v38 }
 0x155   : > { %v901_v47 = vpop.permute.xlu1 %900  ;;  %v899_v50 = vpop.permute.xlu0 %898 }
 0x156   : > { %v1087_v55 = vsel %vm1067_vm10, %v1066_v40, %v901_v47  ;;  %v1085_v57 = vsel %vm1067_vm10, %v1064_v54, %v899_v50 }
 0x159   : > { %v931_v56 = vpop.permute.xlu1 %930  ;;  %v929_v58 = vpop.permute.xlu0 %928 }
 0x15a   : > { %v1108_v13 = vsel %vm1088_vm11, %v1087_v55, %v931_v56  ;;  %v1106_v59 = vsel %vm1088_vm11, %v1085_v57, %v929_v58 }
 0x15b   : > { %2436 = vmatprep.mubr.msk.bf16.mxu0 %vm1145_vm12, %v1106_v59 }
 0x15c   : > { %2437 = vmatmul.mubr.msk.bf16.gmra.mxu0 %vm1145_vm12, %v1108_v13 }
 0x1a0   : > { %v2422_v61 = vpop.f32.mrf.mxu0 }
 0x1a1   : > { %v1292_v63 = vmul.f32 %v2422_v61, %v3065_v60 }
 0x1a2   : > { %v1204_v0 = vpop.f32.mrf.mxu0 }
 0x1a3   : > { %v1319_v1 = vadd.f32 %v3070_v62, %v1292_v63  ;;  %v1290_v2 = vmul.f32 %v3065_v60, %v1204_v0 }
 0x1a4   : > { %v2423_v3 = vpop.f32.mrf.mxu0 }
 0x1a5   : > { %v1339_v5 = vmax.f32 %v1319_v1, 0.0  ;;  %v1317_v6 = vadd.f32 %v3070_v62, %v1290_v2  ;;  %v1293_v7 = vmul.f32 %v2423_v3, %v3065_v60 }
 0x1a6   : > { %v1207_v8 = vpop.f32.mrf.mxu0 }
 0x1a7   : > { %1379 = vst.msk [vmem:[#allocation3 + $0x19] sm:$0xff] %vm350_vm1, %v1339_v5  ;;  %v1337_v9 = vmax.f32 %v1317_v6, 0.0  ;;  %v1320_v10 = vadd.f32 %v3070_v62, %v1293_v7  ;;  %v1291_v11 = vmul.f32 %v3065_v60, %v1207_v8 }
 0x1a9   : > { %1377 = vst.msk [vmem:[#allocation3 + $0x1] sm:$0xff] %vm350_vm1, %v1337_v9  ;;  %v1340_v12 = vmax.f32 %v1320_v10, 0.0  ;;  %v1318_v14 = vadd.f32 %v3070_v62, %v1291_v11 }
 0x1ab   : > { %1380 = vst.msk [vmem:[#allocation3 + $0x21] sm:$0xff] %vm350_vm1, %v1340_v12  ;;  %v1338_v15 = vmax.f32 %v1318_v14, 0.0 }
 0x1ad   : > { %1378 = vst.msk [vmem:[#allocation3 + $0x9] sm:$0xff] %vm350_vm1, %v1338_v15 }
 0x1bf   : > { %v2426_v16 = vpop.f32.mrf.mxu0 }
 0x1c0   : > { %v1296_v43 = vmul.f32 %v2426_v16, %v3065_v60 }
 0x1c1   : > { %v1220_v17 = vpop.f32.mrf.mxu0 }
 0x1c2   : > { %v1323_v18 = vadd.f32 %v3070_v62, %v1296_v43  ;;  %v1294_v19 = vmul.f32 %v3065_v60, %v1220_v17 }
 0x1c3   : > { %v2427_v22 = vpop.f32.mrf.mxu0 }
 0x1c4   : > { %v1343_v20 = vmax.f32 %v1323_v18, 0.0  ;;  %v1321_v21 = vadd.f32 %v3070_v62, %v1294_v19  ;;  %v1297_v53 = vmul.f32 %v2427_v22, %v3065_v60 }
 0x1c5   : > { %v1223_v23 = vpop.f32.mrf.mxu0 }
 0x1c6   : > { %1383 = vst.msk [vmem:[#allocation3 + $0x49] sm:$0xff] %vm350_vm1, %v1343_v20  ;;  %v1341_v24 = vmax.f32 %v1321_v21, 0.0  ;;  %v1324_v31 = vadd.f32 %v3070_v62, %v1297_v53  ;;  %v1295_v25 = vmul.f32 %v3065_v60, %v1223_v23 }
 0x1c8   : > { %1381 = vst.msk [vmem:[#allocation3 + $0x31] sm:$0xff] %vm350_vm1, %v1341_v24  ;;  %v1344_v26 = vmax.f32 %v1324_v31, 0.0  ;;  %v1322_v27 = vadd.f32 %v3070_v62, %v1295_v25 }
 0x1ca   : > { %1384 = vst.msk [vmem:[#allocation3 + $0x51] sm:$0xff] %vm350_vm1, %v1344_v26  ;;  %v1342_v28 = vmax.f32 %v1322_v27, 0.0 }
 0x1cc   : > { %1382 = vst.msk [vmem:[#allocation3 + $0x39] sm:$0xff] %vm350_vm1, %v1342_v28 }
 0x1df   : > { %v2430_v29 = vpop.f32.mrf.mxu0 }
 0x1e0   : > { %v1300_v30 = vmul.f32 %v2430_v29, %v3065_v60 }
 0x1e1   : > { %v1236_v32 = vpop.f32.mrf.mxu0 }
 0x1e2   : > { %v1327_v33 = vadd.f32 %v3070_v62, %v1300_v30  ;;  %v1298_v44 = vmul.f32 %v3065_v60, %v1236_v32 }
 0x1e3   : > { %v2431_v34 = vpop.f32.mrf.mxu0 }
 0x1e4   : > { %v1347_v35 = vmax.f32 %v1327_v33, 0.0  ;;  %v1325_v36 = vadd.f32 %v3070_v62, %v1298_v44  ;;  %v1301_v37 = vmul.f32 %v2431_v34, %v3065_v60 }
 0x1e5   : > { %v1239_v38 = vpop.f32.mrf.mxu0 }
 0x1e6   : > { %1387 = vst.msk [vmem:[#allocation3 + $0x79] sm:$0xff] %vm350_vm1, %v1347_v35  ;;  %v1345_v39 = vmax.f32 %v1325_v36, 0.0  ;;  %v1328_v41 = vadd.f32 %v3070_v62, %v1301_v37  ;;  %v1299_v42 = vmul.f32 %v3065_v60, %v1239_v38 }
 0x1e8   : > { %1385 = vst.msk [vmem:[#allocation3 + $0x61] sm:$0xff] %vm350_vm1, %v1345_v39  ;;  %v1348_v45 = vmax.f32 %v1328_v41, 0.0  ;;  %v1326_v46 = vadd.f32 %v3070_v62, %v1299_v42 }
 0x1ea   : > { %1388 = vst.msk [vmem:[#allocation3 + $0x81] sm:$0xff] %vm350_vm1, %v1348_v45  ;;  %v1346_v47 = vmax.f32 %v1326_v46, 0.0 }
 0x1ec   : > { %1386 = vst.msk [vmem:[#allocation3 + $0x69] sm:$0xff] %vm350_vm1, %v1346_v47 }
 0x1ff   : > { %v2434_v48 = vpop.f32.mrf.mxu0 }
 0x200   : > { %v1304_v49 = vmul.f32 %v2434_v48, %v3065_v60 }
 0x201   : > { %v1252_v50 = vpop.f32.mrf.mxu0 }
 0x202   : > { %v1331_v4 = vadd.f32 %v3070_v62, %v1304_v49  ;;  %v1302_v52 = vmul.f32 %v3065_v60, %v1252_v50 }
 0x203   : > { %v2435_v51 = vpop.f32.mrf.mxu0 }
 0x204   : > { %v1351_v40 = vmax.f32 %v1331_v4, 0.0  ;;  %v1329_v54 = vadd.f32 %v3070_v62, %v1302_v52  ;;  %v1305_v55 = vmul.f32 %v2435_v51, %v3065_v60 }
 0x205   : > { %v1255_v56 = vpop.f32.mrf.mxu0 }
 0x206   : > { %1391 = vst.msk [vmem:[#allocation3 + $0xa9] sm:$0xff] %vm350_vm1, %v1351_v40  ;;  %v1349_v57 = vmax.f32 %v1329_v54, 0.0  ;;  %v1332_v13 = vadd.f32 %v3070_v62, %v1305_v55  ;;  %v1303_v58 = vmul.f32 %v3065_v60, %v1255_v56 }
 0x208   : > { %1389 = vst.msk [vmem:[#allocation3 + $0x91] sm:$0xff] %vm350_vm1, %v1349_v57  ;;  %v1352_v59 = vmax.f32 %v1332_v13, 0.0  ;;  %v1330_v61 = vadd.f32 %v3070_v62, %v1303_v58 }
 0x20a   : > { %1392 = vst.msk [vmem:[#allocation3 + $0xb1] sm:$0xff] %vm350_vm1, %v1352_v59  ;;  %v1350_v63 = vmax.f32 %v1330_v61, 0.0 }
 0x20c   : > { %1390 = vst.msk [vmem:[#allocation3 + $0x99] sm:$0xff] %vm350_vm1, %v1350_v63 }
 0x21c   : > { %v2438_v0 = vpop.f32.mrf.mxu0 }
 0x21d   : > { %v1308_v1 = vmul.f32 %v2438_v0, %v3065_v60 }
 0x21e   : > { %v1268_v2 = vpop.f32.mrf.mxu0 }
 0x21f   : > { %v1335_v3 = vadd.f32 %v3070_v62, %v1308_v1  ;;  %v1306_v5 = vmul.f32 %v3065_v60, %v1268_v2 }
 0x220   : > { %v2439_v6 = vpop.f32.mrf.mxu0 }
 0x221   : > { %v1355_v7 = vmax.f32 %v1335_v3, 0.0  ;;  %v1333_v8 = vadd.f32 %v3070_v62, %v1306_v5  ;;  %v1309_v9 = vmul.f32 %v2439_v6, %v3065_v60 }
 0x222   : > { %v1271_v10 = vpop.f32.mrf.mxu0 }
 0x223   : > { %1395 = vst.msk [vmem:[#allocation3 + $0xd9] sm:$0xff] %vm350_vm1, %v1355_v7  ;;  %v1353_v11 = vmax.f32 %v1333_v8, 0.0  ;;  %v1336_v12 = vadd.f32 %v3070_v62, %v1309_v9  ;;  %v1307_v14 = vmul.f32 %v3065_v60, %v1271_v10 }
 0x225   : > { %1393 = vst.msk [vmem:[#allocation3 + $0xc1] sm:$0xff] %vm350_vm1, %v1353_v11  ;;  %v1356_v15 = vmax.f32 %v1336_v12, 0.0  ;;  %v1334_v16 = vadd.f32 %v3070_v62, %v1307_v14  ;;  %1399 = sbr.rel (%p2331_p7) target bundleno = 557 (0x22d), region = 68 }
 0x227   : > { %1396 = vst.msk [vmem:[#allocation3 + $0xe1] sm:$0xff] %vm350_vm1, %v1356_v15  ;;  %v1354_v43 = vmax.f32 %v1334_v16, 0.0 }
 0x229   : > { %1394 = vst.msk [vmem:[#allocation3 + $0xc9] sm:$0xff] %vm350_vm1, %v1354_v43 }
 0x22a   : > { %vm1402_vm13 = vcmask 58368   ;;  %v2582_v17 = vmov 0.0  }
 0x22b   : > { %1400 = vst.msk [vmem:[#allocation3] sm:$0xff] %vm350_vm1, %v2582_v17  ;;  %1401 = vst.msk [vmem:[#allocation3 + $0x8] sm:$0xff] %vm350_vm1, %v2582_v17 }
 0x22c   : > { %1403 = vst.msk [vmem:[#allocation3 + $0x10] sm:$0x3] %vm1402_vm13, %v2582_v17 }
 0x22d PF: > { %1406 = sbr.rel (%p2335_p9) target bundleno = 565 (0x235), region = 72 }
 0x232   : > { %vm1410_vm14 = vcmask 58368   ;;  %v2583_v60 = vmov 0.0  }
 0x233   : > { %1408 = vst.msk [vmem:[#allocation3 + $0xd8] sm:$0xff] %vm350_vm1, %v2583_v60  ;;  %1409 = vst.msk [vmem:[#allocation3 + $0xe0] sm:$0xff] %vm350_vm1, %v2583_v60 }
 0x234   : > { %1411 = vst.msk [vmem:[#allocation3 + $0xe8] sm:$0x3] %vm1410_vm14, %v2583_v60 }
 0x235 PF: > { %v1460_v62 = vld [vmem:[#allocation3 + $0x2] sm:$0xff]  ;;  %v1462_v21 = vld [vmem:[#allocation3 + $0x1a] sm:$0xff]  ;;  %v1487_v27 = vld [vmem:[#allocation3 + $0x30] sm:$0xff] }
 0x236   : > { %v1461_v18 = vld [vmem:[#allocation3 + $0xa] sm:$0xff]  ;;  %v1436_v19 = vld [vmem:[#allocation3 + $0x1] sm:$0xff]  ;;  %v1438_v24 = vld [vmem:[#allocation3 + $0x19] sm:$0xff] }
 0x237   : > { %v1476_v22 = vpack.c.bf16 %v1461_v18, %v1460_v62  ;;  %v1437_v20 = vld [vmem:[#allocation3 + $0x9] sm:$0xff]  ;;  %v1439_v31 = vld [vmem:[#allocation3 + $0x21] sm:$0xff]  ;;  %v1488_v28 = vld [vmem:[#allocation3 + $0x38] sm:$0xff] }
 0x238   : > { %v1463_v53 = vld [vmem:[#allocation3 + $0x22] sm:$0xff]  ;;  %v1452_v23 = vpack.c.bf16 %v1437_v20, %v1436_v19  ;;  %v1453_v26 = vpack.c.bf16 %v1439_v31, %v1438_v24  ;;  %v1485_v29 = vld [vmem:[#allocation3 + $0x18] sm:$0xff]  ;;  %v3143_v32 = vpack.c.bf16 %v1488_v28, %v1487_v27  ;;  %v1561_v41 = vld [vmem:[#allocation3 + $0x50] sm:$0xff] }
 0x239   : > { %1662 = vrot.lane.b32.xlu1 %v1476_v22, %s2574_s8  ;;  %v1477_v25 = vpack.c.bf16 %v1463_v53, %v1462_v21  ;;  %v1486_v30 = vld [vmem:[#allocation3 + $0x20] sm:$0xff]  ;;  %v1511_v44 = vld [vmem:[#allocation3 + $0x31] sm:$0xff]  ;;  %v1560_v39 = vld [vmem:[#allocation3 + $0x48] sm:$0xff] }
 0x23a   : > { %1638 = vrot.lane.b32.xlu0 %v1452_v23, %s2575_s10  ;;  %v3146_v33 = vpack.c.bf16 %v1486_v30, %v1485_v29  ;;  %v1512_v34 = vld [vmem:[#allocation3 + $0x39] sm:$0xff]  ;;  %v3155_v42 = vpack.c.bf16 %v1561_v41, %v1560_v39  ;;  %v1584_v45 = vld [vmem:[#allocation3 + $0x49] sm:$0xff]  ;;  %v1585_v46 = vld [vmem:[#allocation3 + $0x51] sm:$0xff] }
 0x23b   : > { %v1526_v35 = vpack.c.bf16 %v1512_v34, %v1511_v44  ;;  %v1535_v36 = vld [vmem:[#allocation3 + $0x32] sm:$0xff]  ;;  %v1536_v37 = vld [vmem:[#allocation3 + $0x3a] sm:$0xff]  ;;  %v1599_v50 = vpack.c.bf16 %v1585_v46, %v1584_v45  ;;  %v2529_v52 = vld [vmem:[%s3418_s2 + $0x8] sm:$0xff]  }
 0x23c   : > { %v1550_v38 = vpack.c.bf16 %v1536_v37, %v1535_v36  ;;  %v2526_v47 = vld [vmem:[%s3418_s2 + $0x20] ss:$0 sps:$4 sm:$0xff]   ;;  %v2527_v48 = vld [vmem:[%s3418_s2 + $0x18] sm:$0xff]   ;;  %v2528_v4 = vld [vmem:[%s3418_s2 + $0x10] sm:$0xff]  }
 0x23d   : > { %1664 = vrot.lane.b32.xlu1 %v1477_v25, %s2574_s8  ;;  %2467 = vmatprep.subr.msk.bf16.mxu1 %vm1166_vm4, %v2526_v47  ;;  %v2011_v49 = vsel %vm1166_vm4, %v2526_v47, 0  ;;  %v1608_v51 = vld [vmem:[#allocation3 + $0x4a] sm:$0xff]  ;;  %v1609_v40 = vld [vmem:[#allocation3 + $0x52] sm:$0xff]  ;;  %v2530_v55 = vld [vmem:[%s3418_s2] sm:$0xff]  }
 0x23e   : > { %1640 = vrot.lane.b32.xlu0 %v1453_v26, %s2575_s10  ;;  %2441 = vmatpush3.bf16.msra.mxu1 %v2011_v49  ;;  %v1623_v54 = vpack.c.bf16 %v1609_v40, %v1608_v51  ;;  %v1491_v56 = vld [vmem:[#allocation3 + $0x60] sm:$0xff]  ;;  %v1492_v57 = vld [vmem:[#allocation3 + $0x68] sm:$0xff]  ;;  %v1564_v2 = vld [vmem:[#allocation3 + $0x78] sm:$0xff] }
 0x23f   : > { %2442 = vmatprep.subr.bf16.mxu1 %v2527_v48  ;;  %v3186_v13 = vpack.c.bf16 %v1492_v57, %v1491_v56  ;;  %v1515_v58 = vld [vmem:[#allocation3 + $0x61] sm:$0xff]  ;;  %v1516_v59 = vld [vmem:[#allocation3 + $0x69] sm:$0xff]  ;;  %v1588_v6 = vld [vmem:[#allocation3 + $0x79] sm:$0xff] }
 0x240   : > { %v1528_v61 = vpack.c.bf16 %v1516_v59, %v1515_v58  ;;  %v1539_v63 = vld [vmem:[#allocation3 + $0x62] sm:$0xff]  ;;  %v1540_v0 = vld [vmem:[#allocation3 + $0x6a] sm:$0xff]  ;;  %v1612_v9 = vld [vmem:[#allocation3 + $0x7a] sm:$0xff] }
 0x241   : > { %1688 = vrot.lane.b32.xlu1 %v3143_v32, %s2576_s11  ;;  %v1552_v1 = vpack.c.bf16 %v1540_v0, %v1539_v63  ;;  %v1565_v3 = vld [vmem:[#allocation3 + $0x80] sm:$0xff]  ;;  %v1495_v12 = vld [vmem:[#allocation3 + $0x90] sm:$0xff]  ;;  %v1496_v14 = vld [vmem:[#allocation3 + $0x98] sm:$0xff] }
 0x242   : > { %1686 = vrot.lane.b32.xlu0 %v3146_v33, %s2576_s11  ;;  %2443 = vmatpush3.bf16.msra.mxu1 %v2527_v48  ;;  %v3196_v5 = vpack.c.bf16 %v1565_v3, %v1564_v2  ;;  %v1589_v7 = vld [vmem:[#allocation3 + $0x81] sm:$0xff]  ;;  %v3210_v15 = vpack.c.bf16 %v1496_v14, %v1495_v12  ;;  %v1519_v16 = vld [vmem:[#allocation3 + $0x91] sm:$0xff]  ;;  %v1520_v43 = vld [vmem:[#allocation3 + $0x99] sm:$0xff] }
 0x243   : > { %2444 = vmatprep.subr.bf16.mxu1 %v2528_v4  ;;  %v1601_v8 = vpack.c.bf16 %v1589_v7, %v1588_v6  ;;  %v1613_v10 = vld [vmem:[#allocation3 + $0x82] sm:$0xff]  ;;  %v1530_v17 = vpack.c.bf16 %v1520_v43, %v1519_v16  ;;  %v1543_v60 = vld [vmem:[#allocation3 + $0x92] sm:$0xff]  ;;  %v1544_v62 = vld [vmem:[#allocation3 + $0x9a] sm:$0xff] }
 0x244   : > { %v1625_v11 = vpack.c.bf16 %v1613_v10, %v1612_v9  ;;  %v1554_v18 = vpack.c.bf16 %v1544_v62, %v1543_v60  ;;  %v1568_v19 = vld [vmem:[#allocation3 + $0xa8] sm:$0xff]  ;;  %v1569_v22 = vld [vmem:[#allocation3 + $0xb0] sm:$0xff]  ;;  %v1572_v37 = vld [vmem:[#allocation3 + $0xd8] sm:$0xff] }
 0x245   : > { %1712 = vrot.lane.b32.xlu1 %v1526_v35, %s2577_s12  ;;  %v3220_v20 = vpack.c.bf16 %v1569_v22, %v1568_v19  ;;  %v1592_v21 = vld [vmem:[#allocation3 + $0xa9] sm:$0xff]  ;;  %v1593_v53 = vld [vmem:[#allocation3 + $0xb1] sm:$0xff]  ;;  %v1523_v29 = vld [vmem:[#allocation3 + $0xc1] sm:$0xff] }
 0x246   : > { %1710 = vrot.lane.b32.xlu0 %v1453_v26, %s2577_s12  ;;  %2445 = vmatpush3.bf16.msra.mxu1 %v2528_v4  ;;  %v1603_v23 = vpack.c.bf16 %v1593_v53, %v1592_v21  ;;  %v1616_v24 = vld [vmem:[#allocation3 + $0xaa] sm:$0xff]  ;;  %v1617_v31 = vld [vmem:[#allocation3 + $0xb2] sm:$0xff]  ;;  %v1499_v26 = vld [vmem:[#allocation3 + $0xc0] sm:$0xff] }
 0x247   : > { %2446 = vmatprep.subr.bf16.mxu1 %v2529_v52  ;;  %v1500_v27 = vld [vmem:[#allocation3 + $0xc8] sm:$0xff]  ;;  %v1596_v41 = vld [vmem:[#allocation3 + $0xd9] sm:$0xff] }
 0x248   : > { %v1508_v28 = vpack.c.bf16 %v1500_v27, %v1499_v26  ;;  %v1524_v30 = vld [vmem:[#allocation3 + $0xc9] sm:$0xff]  ;;  %v1597_v45 = vld [vmem:[#allocation3 + $0xe1] sm:$0xff] }
 0x249   : > { %1736 = vrot.lane.b32.xlu1 %v1550_v38, %s2578_s13  ;;  %v1532_v44 = vpack.c.bf16 %v1524_v30, %v1523_v29  ;;  %v1547_v34 = vld [vmem:[#allocation3 + $0xc2] sm:$0xff]  ;;  %v1605_v48 = vpack.c.bf16 %v1597_v45, %v1596_v41  ;;  %v1620_v49 = vld [vmem:[#allocation3 + $0xda] sm:$0xff] }
 0x24a   : > { %1734 = vrot.lane.b32.xlu0 %v1477_v25, %s2578_s13  ;;  %2447 = vmatpush3.bf16.msra.mxu1 %v2529_v52  ;;  %v1627_v25 = vpack.c.bf16 %v1617_v31, %v1616_v24  ;;  %v1412_v57 = vld [vmem:[#allocation3] sm:$0xff]  ;;  %v1413_v58 = vld [vmem:[#allocation3 + $0x8] sm:$0xff] }
 0x24b   : > { %2448 = vmatprep.subr.bf16.mxu1 %v2530_v55 }
 0x24d   : > { %1760 = vrot.lane.b32.xlu1 %v3155_v42, %s2579_s18 }
 0x24e   : > { %1758 = vrot.lane.b32.xlu0 %v3143_v32, %s2579_s18  ;;  %2449 = vmatpush3.bf16.msra.mxu1 %v2530_v55 }
 0x251   : > { %1784 = vrot.lane.b32.xlu1 %v1599_v50, %s2580_s21 }
 0x252   : > { %1782 = vrot.lane.b32.xlu0 %v1526_v35, %s2580_s21 }
 0x255   : > { %1642 = vrot.lane.b32.xlu1 %v1526_v35, %s2575_s10  ;;  %v1548_v35 = vld [vmem:[#allocation3 + $0xca] sm:$0xff] }
 0x256   : > { %1806 = vrot.lane.b32.xlu0 %v1550_v38, %s2581_s15  ;;  %v1556_v36 = vpack.c.bf16 %v1548_v35, %v1547_v34 }
 0x259   : > { %1644 = vrot.lane.b32.xlu1 %v1599_v50, %s2575_s10 }
 0x25a   : > { %1808 = vrot.lane.b32.xlu0 %v1623_v54, %s2581_s15 }
 0x25d   : > { %1668 = vrot.lane.b32.xlu1 %v1623_v54, %s2574_s8 }
 0x25e   : > { %1666 = vrot.lane.b32.xlu0 %v1550_v38, %s2574_s8  ;;  %v1573_v38 = vld [vmem:[#allocation3 + $0xe0] sm:$0xff] }
 0x25f   : > { %v1581_v39 = vpack.c.bf16 %v1573_v38, %v1572_v37 }
 0x261   : > { %1692 = vrot.lane.b32.xlu1 %v3186_v13, %s2576_s11 }
 0x262   : > { %1690 = vrot.lane.b32.xlu0 %v3155_v42, %s2576_s11 }
 0x265   : > { %1716 = vrot.lane.b32.xlu1 %v1528_v61, %s2577_s12 }
 0x266   : > { %1714 = vrot.lane.b32.xlu0 %v1599_v50, %s2577_s12  ;;  %v1621_v50 = vld [vmem:[#allocation3 + $0xe2] sm:$0xff] }
 0x267   : > { %v1629_v51 = vpack.c.bf16 %v1621_v50, %v1620_v49 }
 0x269   : > { %1740 = vrot.lane.b32.xlu1 %v1552_v1, %s2578_s13 }
 0x26a   : > { %1738 = vrot.lane.b32.xlu0 %v1623_v54, %s2578_s13 }
 0x26d   : > { %1764 = vrot.lane.b32.xlu1 %v3196_v5, %s2579_s18 }
 0x26e   : > { %1762 = vrot.lane.b32.xlu0 %v3186_v13, %s2579_s18 }
 0x271   : > { %1788 = vrot.lane.b32.xlu1 %v1601_v8, %s2580_s21 }
 0x272   : > { %1786 = vrot.lane.b32.xlu0 %v1528_v61, %s2580_s21 }
 0x275   : > { %1646 = vrot.lane.b32.xlu1 %v1528_v61, %s2575_s10  ;;  %v1428_v61 = vpack.c.bf16 %v1413_v58, %v1412_v57 }
 0x276   : > { %1810 = vrot.lane.b32.xlu0 %v1552_v1, %s2581_s15 }
 0x279   : > { %1648 = vrot.lane.b32.xlu1 %v1601_v8, %s2575_s10 }
 0x27a   : > { %1812 = vrot.lane.b32.xlu0 %v1625_v11, %s2581_s15 }
 0x27d   : > { %1672 = vrot.lane.b32.xlu1 %v1625_v11, %s2574_s8 }
 0x27e   : > { %1670 = vrot.lane.b32.xlu0 %v1552_v1, %s2574_s8 }
 0x281   : > { %1696 = vrot.lane.b32.xlu1 %v3210_v15, %s2576_s11 }
 0x282   : > { %1694 = vrot.lane.b32.xlu0 %v3196_v5, %s2576_s11 }
 0x285   : > { %1720 = vrot.lane.b32.xlu1 %v1530_v17, %s2577_s12 }
 0x286   : > { %1718 = vrot.lane.b32.xlu0 %v1601_v8, %s2577_s12 }
 0x289   : > { %1744 = vrot.lane.b32.xlu1 %v1554_v18, %s2578_s13 }
 0x28a   : > { %1742 = vrot.lane.b32.xlu0 %v1625_v11, %s2578_s13 }
 0x28d   : > { %1768 = vrot.lane.b32.xlu1 %v3220_v20, %s2579_s18 }
 0x28e   : > { %1766 = vrot.lane.b32.xlu0 %v3210_v15, %s2579_s18 }
 0x291   : > { %1792 = vrot.lane.b32.xlu1 %v1603_v23, %s2580_s21 }
 0x292   : > { %1790 = vrot.lane.b32.xlu0 %v1530_v17, %s2580_s21 }
 0x295   : > { %1650 = vrot.lane.b32.xlu1 %v1530_v17, %s2575_s10 }
 0x296   : > { %1814 = vrot.lane.b32.xlu0 %v1554_v18, %s2581_s15 }
 0x299   : > { %1652 = vrot.lane.b32.xlu1 %v1603_v23, %s2575_s10 }
 0x29a   : > { %1816 = vrot.lane.b32.xlu0 %v1627_v25, %s2581_s15 }
 0x29d   : > { %1676 = vrot.lane.b32.xlu1 %v1627_v25, %s2574_s8 }
 0x29e   : > { %1674 = vrot.lane.b32.xlu0 %v1554_v18, %s2574_s8 }
 0x2a1   : > { %1700 = vrot.lane.b32.xlu1 %v1508_v28, %s2576_s11 }
 0x2a2   : > { %1698 = vrot.lane.b32.xlu0 %v3220_v20, %s2576_s11 }
 0x2a5   : > { %1724 = vrot.lane.b32.xlu1 %v1532_v44, %s2577_s12 }
 0x2a6   : > { %1722 = vrot.lane.b32.xlu0 %v1603_v23, %s2577_s12 }
 0x2a9   : > { %1748 = vrot.lane.b32.xlu1 %v1556_v36, %s2578_s13 }
 0x2aa   : > { %1746 = vrot.lane.b32.xlu0 %v1627_v25, %s2578_s13 }
 0x2ab   : > { %v1663_v46 = vpop.permute.xlu1 %1662 }
 0x2ac   : > { %v1639_v47 = vpop.permute.xlu0 %1638 }
 0x2ad   : > { %1772 = vrot.lane.b32.xlu1 %v1581_v39, %s2579_s18  ;;  %v1824_v1 = vsel %vm350_vm1, %v1428_v61, %v1639_v47 }
 0x2ae   : > { %1770 = vrot.lane.b32.xlu0 %v1508_v28, %s2579_s18  ;;  %v1847_v3 = vsel %vm962_vm5, %v1824_v1, %v1663_v46 }
 0x2af   : > { %v1665_v4 = vpop.permute.xlu1 %1664 }
 0x2b0   : > { %v1641_v52 = vpop.permute.xlu0 %1640 }
 0x2b1   : > { %1796 = vrot.lane.b32.xlu1 %v1605_v48, %s2580_s21  ;;  %v1827_v7 = vsel %vm350_vm1, %v3146_v33, %v1641_v52 }
 0x2b2   : > { %1794 = vrot.lane.b32.xlu0 %v1532_v44, %s2580_s21  ;;  %v1849_v12 = vsel %vm962_vm5, %v1827_v7, %v1665_v4 }
 0x2b3   : > { %v1689_v40 = vpop.permute.xlu1 %1688 }
 0x2b4   : > { %v1687_v54 = vpop.permute.xlu0 %1686  ;;  %v1865_v43 = vsel %vm983_vm6, %v1849_v12, %v1689_v40 }
 0x2b5   : > { %1820 = vrot.lane.b32.xlu1 %v1629_v51, %s2581_s15  ;;  %v1863_v8 = vsel %vm983_vm6, %v1847_v3, %v1687_v54 }
 0x2b6   : > { %1818 = vrot.lane.b32.xlu0 %v1556_v36, %s2581_s15 }
 0x2b7   : > { %v1713_v55 = vpop.permute.xlu1 %1712 }
 0x2b8   : > { %v1711_v56 = vpop.permute.xlu0 %1710  ;;  %v1881_v62 = vsel %vm1004_vm7, %v1865_v43, %v1713_v55 }
 0x2b9   : > { %v1879_v10 = vsel %vm1004_vm7, %v1863_v8, %v1711_v56 }
 0x2bb   : > { %v1737_v59 = vpop.permute.xlu1 %1736 }
 0x2bc   : > { %v1735_v63 = vpop.permute.xlu0 %1734  ;;  %v1897_v18 = vsel %vm1025_vm8, %v1881_v62, %v1737_v59 }
 0x2bd   : > { %v1895_v11 = vsel %vm1025_vm8, %v1879_v10, %v1735_v63 }
 0x2bf   : > { %v1761_v0 = vpop.permute.xlu1 %1760 }
 0x2c0   : > { %v1759_v2 = vpop.permute.xlu0 %1758  ;;  %v1913_v19 = vsel %vm1046_vm9, %v1897_v18, %v1761_v0 }
 0x2c1   : > { %v1911_v14 = vsel %vm1046_vm9, %v1895_v11, %v1759_v2 }
 0x2c3   : > { %v1785_v6 = vpop.permute.xlu1 %1784 }
 0x2c4   : > { %v1783_v9 = vpop.permute.xlu0 %1782  ;;  %v1929_v21 = vsel %vm1067_vm10, %v1913_v19, %v1785_v6 }
 0x2c5   : > { %v1927_v17 = vsel %vm1067_vm10, %v1911_v14, %v1783_v9 }
 0x2c7   : > { %v1643_v16 = vpop.permute.xlu1 %1642 }
 0x2c8   : > { %v1807_v60 = vpop.permute.xlu0 %1806  ;;  %v1830_v35 = vsel %vm350_vm1, %v3143_v32, %v1643_v16 }
 0x2c9   : > { %v1943_v33 = vsel %vm1088_vm11, %v1927_v17, %v1807_v60 }
 0x2ca   : > { %2450 = vmatprep.mubr.msk.bf16.mxu1 %vm1145_vm12, %v1943_v33 }
 0x2cb   : > { %v1645_v22 = vpop.permute.xlu1 %1644 }
 0x2cc   : > { %v1809_v53 = vpop.permute.xlu0 %1808  ;;  %v1833_v45 = vsel %vm350_vm1, %v3155_v42, %v1645_v22 }
 0x2cd   : > { %v1945_v23 = vsel %vm1088_vm11, %v1929_v21, %v1809_v53 }
 0x2ce   : > { %2451 = vmatmul.mubr.msk.bf16.vlgmr.msra.gmra.mxu1 %vm1145_vm12, %v1945_v23 }
 0x2cf   : > { %v1669_v24 = vpop.permute.xlu1 %1668 }
 0x2d0   : > { %v1667_v31 = vpop.permute.xlu0 %1666  ;;  %v1853_v47 = vsel %vm962_vm5, %v1833_v45, %v1669_v24 }
 0x2d1   : > { %v1851_v36 = vsel %vm962_vm5, %v1830_v35, %v1667_v31 }
 0x2d3   : > { %v1693_v25 = vpop.permute.xlu1 %1692 }
 0x2d4   : > { %v1691_v26 = vpop.permute.xlu0 %1690  ;;  %v1869_v32 = vsel %vm983_vm6, %v1853_v47, %v1693_v25 }
 0x2d5   : > { %v1867_v38 = vsel %vm983_vm6, %v1851_v36, %v1691_v26 }
 0x2d7   : > { %v1717_v27 = vpop.permute.xlu1 %1716 }
 0x2d8   : > { %v1715_v28 = vpop.permute.xlu0 %1714  ;;  %v1885_v52 = vsel %vm1004_vm7, %v1869_v32, %v1717_v27 }
 0x2d9   : > { %v1883_v41 = vsel %vm1004_vm7, %v1867_v38, %v1715_v28 }
 0x2db   : > { %v1741_v29 = vpop.permute.xlu1 %1740 }
 0x2dc   : > { %v1739_v30 = vpop.permute.xlu0 %1738  ;;  %v1901_v40 = vsel %vm1025_vm8, %v1885_v52, %v1741_v29 }
 0x2dd   : > { %v1899_v46 = vsel %vm1025_vm8, %v1883_v41, %v1739_v30 }
 0x2df   : > { %v1765_v44 = vpop.permute.xlu1 %1764 }
 0x2e0   : > { %v1763_v34 = vpop.permute.xlu0 %1762  ;;  %v1917_v42 = vsel %vm1046_vm9, %v1901_v40, %v1765_v44 }
 0x2e1   : > { %v1915_v48 = vsel %vm1046_vm9, %v1899_v46, %v1763_v34 }
 0x2e3   : > { %v1789_v37 = vpop.permute.xlu1 %1788 }
 0x2e4   : > { %v1787_v39 = vpop.permute.xlu0 %1786  ;;  %v1933_v55 = vsel %vm1067_vm10, %v1917_v42, %v1789_v37 }
 0x2e5   : > { %v1931_v50 = vsel %vm1067_vm10, %v1915_v48, %v1787_v39 }
 0x2e7   : > { %v1647_v49 = vpop.permute.xlu1 %1646 }
 0x2e8   : > { %v1811_v4 = vpop.permute.xlu0 %1810  ;;  %v1836_v8 = vsel %vm350_vm1, %v3186_v13, %v1647_v49 }
 0x2e9   : > { %v1947_v51 = vsel %vm1088_vm11, %v1931_v50, %v1811_v4 }
 0x2ea   : > { %2454 = vmatprep.mubr.msk.bf16.mxu1 %vm1145_vm12, %v1947_v51 }
 0x2eb   : > { %v1649_v54 = vpop.permute.xlu1 %1648 }
 0x2ec   : > { %v1813_v56 = vpop.permute.xlu0 %1812  ;;  %v1839_v16 = vsel %vm350_vm1, %v3196_v5, %v1649_v54 }
 0x2ed   : > { %v1949_v57 = vsel %vm1088_vm11, %v1933_v55, %v1813_v56  ;;  %v3330_v56 = vld [vmem:[%s3421_s5] ss:$0 sm:$0xff] }
 0x2ee   : > { %2455 = vmatmul.mubr.msk.bf16.gmra.mxu1 %vm1145_vm12, %v1949_v57 }
 0x2ef   : > { %v1673_v58 = vpop.permute.xlu1 %1672 }
 0x2f0   : > { %v1671_v59 = vpop.permute.xlu0 %1670  ;;  %v1857_v17 = vsel %vm962_vm5, %v1839_v16, %v1673_v58  ;;  %v3335_v58 = vld [vmem:[%s3422_s6] ss:$0 sm:$0xff] }
 0x2f1   : > { %v1855_v9 = vsel %vm962_vm5, %v1836_v8, %v1671_v59 }
 0x2f3   : > { %v1697_v61 = vpop.permute.xlu1 %1696 }
 0x2f4   : > { %v1695_v63 = vpop.permute.xlu0 %1694  ;;  %v1873_v13 = vsel %vm983_vm6, %v1857_v17, %v1697_v61  ;;  %v2112_v61 = vld [vmem:[#allocation2 + $0x49] sm:$0xff] }
 0x2f5   : > { %v1871_v11 = vsel %vm983_vm6, %v1855_v9, %v1695_v63  ;;  %v2113_v9 = vld [vmem:[#allocation2 + $0x51] sm:$0xff] }
 0x2f7   : > { %v1721_v0 = vpop.permute.xlu1 %1720 }
 0x2f8   : > { %v1719_v1 = vpop.permute.xlu0 %1718  ;;  %v1889_v19 = vsel %vm1004_vm7, %v1873_v13, %v1721_v0 }
 0x2f9   : > { %v1887_v14 = vsel %vm1004_vm7, %v1871_v11, %v1719_v1 }
 0x2fb   : > { %v1745_v2 = vpop.permute.xlu1 %1744 }
 0x2fc   : > { %v1743_v3 = vpop.permute.xlu0 %1742  ;;  %v1905_v21 = vsel %vm1025_vm8, %v1889_v19, %v1745_v2  ;;  %v2110_v2 = vld [vmem:[#allocation2 + $0x31] sm:$0xff] }
 0x2fd   : > { %v1903_v43 = vsel %vm1025_vm8, %v1887_v14, %v1743_v3 }
 0x2ff   : > { %v1769_v6 = vpop.permute.xlu1 %1768 }
 0x300   : > { %v1767_v7 = vpop.permute.xlu0 %1766  ;;  %v1921_v5 = vsel %vm1046_vm9, %v1905_v21, %v1769_v6  ;;  %v2116_v21 = vld [vmem:[#allocation2 + $0x79] sm:$0xff] }
 0x301   : > { %v1919_v60 = vsel %vm1046_vm9, %v1903_v43, %v1767_v7  ;;  %v2111_v43 = vld [vmem:[#allocation2 + $0x39] sm:$0xff] }
 0x303   : > { %v1793_v10 = vpop.permute.xlu1 %1792 }
 0x304   : > { %v1791_v12 = vpop.permute.xlu0 %1790  ;;  %v1937_v23 = vsel %vm1067_vm10, %v1921_v5, %v1793_v10 }
 0x305   : > { %v1935_v33 = vsel %vm1067_vm10, %v1919_v60, %v1791_v12 }
 0x307   : > { %v1651_v62 = vpop.permute.xlu1 %1650 }
 0x308   : > { %v1815_v18 = vpop.permute.xlu0 %1814  ;;  %v1842_v38 = vsel %vm350_vm1, %v3210_v15, %v1651_v62 }
 0x309   : > { %v1951_v22 = vsel %vm1088_vm11, %v1935_v33, %v1815_v18 }
 0x30a   : > { %2458 = vmatprep.mubr.msk.bf16.mxu1 %vm1145_vm12, %v1951_v22 }
 0x30b   : > { %v1653_v53 = vpop.permute.xlu1 %1652 }
 0x30c   : > { %v1817_v24 = vpop.permute.xlu0 %1816  ;;  %v1845_v37 = vsel %vm350_vm1, %v3220_v20, %v1653_v53 }
 0x30d   : > { %v1953_v31 = vsel %vm1088_vm11, %v1937_v23, %v1817_v24  ;;  %v2114_v24 = vld [vmem:[#allocation2 + $0x61] sm:$0xff] }
 0x30e   : > { %2459 = vmatmul.mubr.msk.bf16.gmra.mxu1 %vm1145_vm12, %v1953_v31 }
 0x30f   : > { %v1677_v25 = vpop.permute.xlu1 %1676 }
 0x310   : > { %v1675_v26 = vpop.permute.xlu0 %1674  ;;  %v1861_v39 = vsel %vm962_vm5, %v1845_v37, %v1677_v25 }
 0x311   : > { %v1859_v41 = vsel %vm962_vm5, %v1842_v38, %v1675_v26 }
 0x313   : > { %v1701_v27 = vpop.permute.xlu1 %1700 }
 0x314   : > { %v1699_v28 = vpop.permute.xlu0 %1698  ;;  %v1877_v45 = vsel %vm983_vm6, %v1861_v39, %v1701_v27 }
 0x315   : > { %v1875_v47 = vsel %vm983_vm6, %v1859_v41, %v1699_v28  ;;  %v2117_v28 = vld [vmem:[#allocation2 + $0x81] sm:$0xff] }
 0x317   : > { %v1725_v29 = vpop.permute.xlu1 %1724 }
 0x318   : > { %v1723_v30 = vpop.permute.xlu0 %1722  ;;  %v1893_v48 = vsel %vm1004_vm7, %v1877_v45, %v1725_v29 }
 0x319   : > { %v1891_v32 = vsel %vm1004_vm7, %v1875_v47, %v1723_v30 }
 0x31b   : > { %v1749_v44 = vpop.permute.xlu1 %1748 }
 0x31c   : > { %v1747_v34 = vpop.permute.xlu0 %1746  ;;  %v1909_v50 = vsel %vm1025_vm8, %v1893_v48, %v1749_v44 }
 0x31d   : > { %v1907_v20 = vsel %vm1025_vm8, %v1891_v32, %v1747_v34 }
 0x31f   : > { %v1773_v35 = vpop.permute.xlu1 %1772 }
 0x320   : > { %v1771_v36 = vpop.permute.xlu0 %1770  ;;  %v1925_v15 = vsel %vm1046_vm9, %v1909_v50, %v1773_v35 }
 0x321   : > { %v1923_v4 = vsel %vm1046_vm9, %v1907_v20, %v1771_v36  ;;  %v2115_v36 = vld [vmem:[#allocation2 + $0x69] sm:$0xff] }
 0x323   : > { %v1797_v46 = vpop.permute.xlu1 %1796 }
 0x324   : > { %v1795_v49 = vpop.permute.xlu0 %1794  ;;  %v1941_v52 = vsel %vm1067_vm10, %v1925_v15, %v1797_v46  ;;  %v2118_v15 = vld [vmem:[#allocation2 + $0x91] sm:$0xff] }
 0x325   : > { %v1939_v40 = vsel %vm1067_vm10, %v1923_v4, %v1795_v49  ;;  %v2120_v49 = vld [vmem:[#allocation2 + $0xa9] sm:$0xff] }
 0x327   : > { %v1821_v51 = vpop.permute.xlu1 %1820 }
 0x328   : > { %v1957_v42 = vsel %vm1088_vm11, %v1941_v52, %v1821_v51  ;;  %v1819_v54 = vpop.permute.xlu0 %1818 }
 0x329   : > { %v1955_v55 = vsel %vm1088_vm11, %v1939_v40, %v1819_v54 }
 0x32a   : > { %2462 = vmatprep.mubr.msk.bf16.mxu1 %vm1145_vm12, %v1955_v55 }
 0x32b   : > { %2463 = vmatmul.mubr.msk.bf16.gmra.mxu1 %vm1145_vm12, %v1957_v42  ;;  %v2121_v42 = vld [vmem:[#allocation2 + $0xb1] sm:$0xff] }
 0x38e   : > { %v2452_v57 = vpop.f32.mrf.mxu1 }
 0x38f   : > { %v2135_v59 = vmul.f32 %v2452_v57, %v3330_v56 }
 0x390   : > { %v2047_v63 = vpop.f32.mrf.mxu1 }
 0x391   : > { %v2158_v0 = vadd.f32 %v3335_v58, %v2135_v59  ;;  %v2133_v1 = vmul.f32 %v3330_v56, %v2047_v63  ;;  %v2119_v63 = vld [vmem:[#allocation2 + $0x99] sm:$0xff] }
 0x392   : > { %v2453_v3 = vpop.f32.mrf.mxu1 }
 0x393   : > { %v2174_v6 = vadd.f32 %v2158_v0, %v2112_v61  ;;  %v2156_v7 = vadd.f32 %v3335_v58, %v2133_v1  ;;  %v2136_v8 = vmul.f32 %v2453_v3, %v3330_v56 }
 0x394   : > { %v2050_v10 = vpop.f32.mrf.mxu1 }
 0x395   : > { %v2190_v11 = vmax.f32 %v2174_v6, 0.0  ;;  %v2172_v12 = vadd.f32 %v2156_v7, %v2110_v2  ;;  %v2159_v14 = vadd.f32 %v3335_v58, %v2136_v8  ;;  %v2134_v16 = vmul.f32 %v3330_v56, %v2050_v10  ;;  %v2124_v10 = vld [vmem:[#allocation2 + $0xd9] sm:$0xff] }
 0x397   : > { %2206 = vst.msk [vmem:[%s2730_s22 + $0x10] sm:$0xff] %vm350_vm1, %v2190_v11  ;;  %v2188_v17 = vmax.f32 %v2172_v12, 0.0  ;;  %v2175_v60 = vadd.f32 %v2159_v14, %v2113_v9  ;;  %v2157_v62 = vadd.f32 %v3335_v58, %v2134_v16  ;;  %v2122_v16 = vld [vmem:[#allocation2 + $0xc1] sm:$0xff] }
 0x399   : > { %2204 = vst.msk [vmem:[%s2730_s22] sm:$0xff] %vm350_vm1, %v2188_v17  ;;  %v2191_v13 = vmax.f32 %v2175_v60, 0.0  ;;  %v2173_v33 = vadd.f32 %v2157_v62, %v2111_v43 }
 0x39b   : > { %2207 = vst.msk [vmem:[%s2730_s22 + $0x18] sm:$0xff] %vm350_vm1, %v2191_v13  ;;  %v2189_v18 = vmax.f32 %v2173_v33, 0.0  ;;  %v2125_v13 = vld [vmem:[#allocation2 + $0xe1] sm:$0xff] }
 0x39d   : > { %2205 = vst.msk [vmem:[%s2730_s22 + $0x8] sm:$0xff] %vm350_vm1, %v2189_v18 }
 0x3ae   : > { %v2456_v19 = vpop.f32.mrf.mxu1 }
 0x3af   : > { %v2139_v22 = vmul.f32 %v2456_v19, %v3330_v56 }
 0x3b0   : > { %v2063_v5 = vpop.f32.mrf.mxu1 }
 0x3b1   : > { %v2162_v53 = vadd.f32 %v3335_v58, %v2139_v22  ;;  %v2137_v23 = vmul.f32 %v3330_v56, %v2063_v5  ;;  %v2123_v5 = vld [vmem:[#allocation2 + $0xc9] sm:$0xff] }
 0x3b2   : > { %v2457_v31 = vpop.f32.mrf.mxu1 }
 0x3b3   : > { %v2178_v25 = vadd.f32 %v2162_v53, %v2116_v21  ;;  %v2160_v26 = vadd.f32 %v3335_v58, %v2137_v23  ;;  %v2140_v27 = vmul.f32 %v2457_v31, %v3330_v56 }
 0x3b4   : > { %v2066_v29 = vpop.f32.mrf.mxu1 }
 0x3b5   : > { %v2194_v30 = vmax.f32 %v2178_v25, 0.0  ;;  %v2176_v44 = vadd.f32 %v2160_v26, %v2114_v24  ;;  %v2163_v34 = vadd.f32 %v3335_v58, %v2140_v27  ;;  %v2138_v35 = vmul.f32 %v3330_v56, %v2066_v29 }
 0x3b7   : > { %2210 = vst.msk [vmem:[%s2730_s22 + $0x30] sm:$0xff] %vm350_vm1, %v2194_v30  ;;  %v2192_v37 = vmax.f32 %v2176_v44, 0.0  ;;  %v2179_v38 = vadd.f32 %v2163_v34, %v2117_v28  ;;  %v2161_v39 = vadd.f32 %v3335_v58, %v2138_v35 }
 0x3b9   : > { %2208 = vst.msk [vmem:[%s2730_s22 + $0x20] sm:$0xff] %vm350_vm1, %v2192_v37  ;;  %v2195_v41 = vmax.f32 %v2179_v38, 0.0  ;;  %v2177_v45 = vadd.f32 %v2161_v39, %v2115_v36 }
 0x3bb   : > { %2211 = vst.msk [vmem:[%s2730_s22 + $0x38] sm:$0xff] %vm350_vm1, %v2195_v41  ;;  %v2193_v46 = vmax.f32 %v2177_v45, 0.0 }
 0x3bd   : > { %2209 = vst.msk [vmem:[%s2730_s22 + $0x28] sm:$0xff] %vm350_vm1, %v2193_v46 }
 0x3ce   : > { %v2460_v47 = vpop.f32.mrf.mxu1 }
 0x3cf   : > { %v2143_v48 = vmul.f32 %v2460_v47, %v3330_v56 }
 0x3d0   : > { %v2079_v32 = vpop.f32.mrf.mxu1 }
 0x3d1   : > { %v2166_v50 = vadd.f32 %v3335_v58, %v2143_v48  ;;  %v2141_v20 = vmul.f32 %v3330_v56, %v2079_v32 }
 0x3d2   : > { %v2461_v4 = vpop.f32.mrf.mxu1 }
 0x3d3   : > { %v2182_v52 = vadd.f32 %v2166_v50, %v2120_v49  ;;  %v2164_v51 = vadd.f32 %v3335_v58, %v2141_v20  ;;  %v2144_v40 = vmul.f32 %v2461_v4, %v3330_v56 }
 0x3d4   : > { %v2082_v54 = vpop.f32.mrf.mxu1 }
 0x3d5   : > { %v2198_v55 = vmax.f32 %v2182_v52, 0.0  ;;  %v2180_v57 = vadd.f32 %v2164_v51, %v2118_v15  ;;  %v2167_v59 = vadd.f32 %v3335_v58, %v2144_v40  ;;  %v2142_v61 = vmul.f32 %v3330_v56, %v2082_v54 }
 0x3d7   : > { %2214 = vst.msk [vmem:[%s2730_s22 + $0x50] sm:$0xff] %vm350_vm1, %v2198_v55  ;;  %v2196_v0 = vmax.f32 %v2180_v57, 0.0  ;;  %v2183_v1 = vadd.f32 %v2167_v59, %v2121_v42  ;;  %v2165_v2 = vadd.f32 %v3335_v58, %v2142_v61 }
 0x3d9   : > { %2212 = vst.msk [vmem:[%s2730_s22 + $0x40] sm:$0xff] %vm350_vm1, %v2196_v0  ;;  %v2199_v3 = vmax.f32 %v2183_v1, 0.0  ;;  %v2181_v6 = vadd.f32 %v2165_v2, %v2119_v63 }
 0x3db   : > { %2215 = vst.msk [vmem:[%s2730_s22 + $0x58] sm:$0xff] %vm350_vm1, %v2199_v3  ;;  %v2197_v7 = vmax.f32 %v2181_v6, 0.0 }
 0x3dd   : > { %2213 = vst.msk [vmem:[%s2730_s22 + $0x48] sm:$0xff] %vm350_vm1, %v2197_v7 }
 0x3eb   : > { %v2464_v8 = vpop.f32.mrf.mxu1 }
 0x3ec   : > { %v2147_v9 = vmul.f32 %v2464_v8, %v3330_v56 }
 0x3ed   : > { %v2095_v11 = vpop.f32.mrf.mxu1 }
 0x3ee   : > { %v2170_v12 = vadd.f32 %v3335_v58, %v2147_v9  ;;  %v2145_v14 = vmul.f32 %v3330_v56, %v2095_v11 }
 0x3ef   : > { %v2465_v43 = vpop.f32.mrf.mxu1 }
 0x3f0   : > { %v2186_v17 = vadd.f32 %v2170_v12, %v2124_v10  ;;  %v2168_v60 = vadd.f32 %v3335_v58, %v2145_v14  ;;  %v2148_v62 = vmul.f32 %v2465_v43, %v3330_v56 }
 0x3f1   : > { %v2098_v33 = vpop.f32.mrf.mxu1 }
 0x3f2   : > { %v2202_v18 = vmax.f32 %v2186_v17, 0.0  ;;  %v2184_v19 = vadd.f32 %v2168_v60, %v2122_v16  ;;  %v2171_v22 = vadd.f32 %v3335_v58, %v2148_v62  ;;  %v2146_v21 = vmul.f32 %v3330_v56, %v2098_v33 }
 0x3f4   : > { %2218 = vst.msk [vmem:[%s2730_s22 + $0x70] sm:$0xff] %vm350_vm1, %v2202_v18  ;;  %v2200_v53 = vmax.f32 %v2184_v19, 0.0  ;;  %v2187_v23 = vadd.f32 %v2171_v22, %v2125_v13  ;;  %v2169_v24 = vadd.f32 %v3335_v58, %v2146_v21 }
 0x3f6   : > { %2216 = vst.msk [vmem:[%s2730_s22 + $0x60] sm:$0xff] %vm350_vm1, %v2200_v53  ;;  %v2203_v31 = vmax.f32 %v2187_v23, 0.0  ;;  %v2185_v25 = vadd.f32 %v2169_v24, %v2123_v5 }
 0x3f8   : > { %2219 = vst.msk [vmem:[%s2730_s22 + $0x78] sm:$0xff] %vm350_vm1, %v2203_v31  ;;  %v2201_v26 = vmax.f32 %v2185_v25, 0.0 }
 0x3fa   : > { %2217 = vst.msk [vmem:[%s2730_s22 + $0x68] sm:$0xff] %vm350_vm1, %v2201_v26 }
 0x3fb PF: > { %s17_s28 = sadd.s32 1, %s2569_s28   ;;  %s3424_s24 = smov %s2561_s26 }
 0x3fc   : > { %p14_p11 = scmp.ge.s32.totalorder %s17_s28, 6   ;;  %s3425_s25 = smov %s2565_s27 }
 0x3fd   : > { %s3426_s26 = smov %s3429_s29  ;;  %s3427_s27 = smov %s3433_s30 }
 0x3fe   :  { %16 = sbr.rel (!%p14_p11) target bundleno = 3 (0x3), region = 112 }

</bundles_post_ra>
